<compile_context>
chip_gen: v5e
topology: v5e:2x2
jax: 0.10.0
libtpu: 0.0.40
codegen_flags: <defaults>
</compile_context>

<pallas_src>
import jax
import jax.numpy as jnp
from jax.experimental import pallas as pl
from jax.experimental.pallas import tpu as pltpu


def _patch_embed_kernel(p_ref, w_ref, b_ref, o_ref):
    # p_ref: (TILE_M, K) bf16   w_ref: (K, E) bf16 (VMEM-resident, 1-buffered)
    # b_ref: (1, E) f32         o_ref: (TILE_M, E) f32
    # One fat, lane-dense MXU contraction per grid step, f32 accumulation.
    o_ref[...] = (
        jnp.dot(p_ref[...], w_ref[...], preferred_element_type=jnp.float32)
        + b_ref[...]
    ).astype(o_ref.dtype)


def prepare_patch_embedding_params(weight, bias):
    """One-time preprocessing (keep OUT of the per-forward hot path).

    weight: (E, C, P, P) Conv2d OIHW weight -> (K, E) bf16 matmul operand
    bias:   (E,)                            -> (1, E) f32
    """
    E = weight.shape[0]
    K = weight.shape[1] * weight.shape[2] * weight.shape[3]
    w_ke = weight.reshape(E, K).T.astype(jnp.bfloat16)      # (K, E)
    b_1e = bias.reshape(1, E).astype(jnp.float32)
    return w_ke, b_1e


def _choose_tile_m(M):
    # Fat tiles to fill the MXU / amortize per-step overhead; keep >= 2 grid
    # steps when possible (v7x has 2 TensorCores), tile a multiple of 8
    # (f32 sublane).  K and E stay lane-dense (multiples of 128) regardless.
    if M >= 512:
        return 256
    half = -(-M // 2)                 # ceil(M / 2) -> at least 2 grid steps
    return max(8, -(-half // 8) * 8)  # round up to a multiple of 8


def patch_embedding_forward(x, w_ke, b_1e, patch_size):
    """Pallas implementation of PatchEmbedding.forward.

    x:     (B, C, H, W)  NCHW, PyTorch convention
    w_ke:  (K, E)  bf16  preprocessed Conv2d weight (K = C*P*P)
    b_1e:  (1, E)  f32   preprocessed Conv2d bias
    returns (B, S, E) f32 with S = (H/P)*(W/P)
    """
    B, C, H, W = x.shape
    P = patch_size
    assert H % P == 0 and W % P == 0, "spatial dims must be divisible by patch_size"
    K, E = w_ke.shape
    assert K == C * P * P
    Hp, Wp = H // P, W // P
    S = Hp * Wp
    M = B * S

    # im2col in bf16: (B, C, H, W) -> (M, K); patch flatten order (c, ky, kx)
    # matches PyTorch's weight.reshape(E, C*P*P) flatten order.
    # TODO(synk): for very large images, stream patch rows via BlockSpec on x
    # instead of materializing `patches` in HBM.
    patches = x.astype(jnp.bfloat16).reshape(B, C, Hp, P, Wp, P)
    patches = patches.transpose(0, 2, 4, 1, 3, 5)            # (B, Hp, Wp, C, P, P)
    patches = patches.reshape(M, K)

    tile_m = _choose_tile_m(M)
    grid_m = pl.cdiv(M, tile_m)
    m_pad = grid_m * tile_m
    if m_pad != M:
        patches = jnp.pad(patches, ((0, m_pad - M), (0, 0)))

    out = pl.pallas_call(
        _patch_embed_kernel,
        out_shape=jax.ShapeDtypeStruct((m_pad, E), jnp.float32),
        grid=(grid_m,),
        in_specs=[
            pl.BlockSpec((tile_m, K), lambda i: (i, 0)),
            # Grid-invariant operands: constant index_map + single-buffered.
            pl.BlockSpec((K, E), lambda i: (0, 0),
                         pipeline_mode=pl.Buffered(1)),
            pl.BlockSpec((1, E), lambda i: (0, 0),
                         pipeline_mode=pl.Buffered(1)),
        ],
        out_specs=pl.BlockSpec((tile_m, E), lambda i: (i, 0)),
        compiler_params=pltpu.CompilerParams(
            dimension_semantics=("parallel",)),
    )(patches, w_ke, b_1e)

    return out[:M].reshape(B, S, E)


def reference(x, weight, bias, patch_size):
    """Pure-JAX reference of the PyTorch forward (for correctness check)."""
    P = patch_size
    B = x.shape[0]
    E = weight.shape[0]
    o = jax.lax.conv_general_dilated(
        x.astype(jnp.float32), weight.astype(jnp.float32),
        window_strides=(P, P), padding="VALID",
        dimension_numbers=("NCHW", "OIHW", "NCHW"),
        precision=jax.lax.Precision.HIGHEST)
    o = o + bias.astype(jnp.float32).reshape(1, E, 1, 1)
    o = o.reshape(B, E, -1)                                  # (B, E, S)
    return jnp.transpose(o, (0, 2, 1))                       # (B, S, E)


if __name__ == "__main__":
    key = jax.random.PRNGKey(0)

    B, C = 2, 3                    # module hard-codes 3 input channels
    H = W = 64                     # small spatial size
    patch_size = 16                # module default
    embedding_dim = 768            # module default
    S = (H // patch_size) * (W // patch_size)   # 16 patches per image
    K = C * patch_size * patch_size             # 768

    ks = jax.random.split(key, 3)
    x = jax.random.normal(ks[0], (B, C, H, W), jnp.float32)
    weight = 0.02 * jax.random.normal(
        ks[1], (embedding_dim, C, patch_size, patch_size), jnp.float32)
    bias = 0.1 * jax.random.normal(ks[2], (embedding_dim,), jnp.float32)

    # One-time parameter preprocessing (outside the per-forward hot path).
    w_ke, b_1e = prepare_patch_embedding_params(weight, bias)

    out = patch_embedding_forward(x, w_ke, b_1e, patch_size)
    out = jax.block_until_ready(out)

    ref = reference(x, weight, bias, patch_size)
    assert out.shape == (B, S, embedding_dim), out.shape
    # bf16 MXU operands with f32 accumulation -> loosened tolerance vs. f32 ref.
    assert jnp.allclose(out, ref, atol=2e-2, rtol=2e-2), \
        float(jnp.max(jnp.abs(out - ref)))
    print("KERNEL_OK")
</pallas_src>

<mosaic_0001>
module attributes {stable_mosaic.version = 11 : i64} {
  func.func @_patch_embed_kernel(%arg0: i32, %arg1: memref<16x768xbf16, #tpu.memory_space<vmem>>, %arg2: memref<768x768xbf16, #tpu.memory_space<vmem>>, %arg3: memref<1x768xf32, #tpu.memory_space<vmem>>, %arg4: memref<16x768xf32, #tpu.memory_space<vmem>>) attributes {dimension_semantics = [#tpu.dimension_semantics<parallel>], iteration_bounds = array<i64: 2>, scalar_prefetch = 0 : i64, scratch_operands = 0 : i64, tpu.core_type = #tpu.core_type<tc>, window_params = [{transform_indices = @transform_0, window_bounds = array<i64: 16, 768>}, {pipeline_mode = #tpu.pipeline_mode<synchronous>, transform_indices = @transform_1, window_bounds = array<i64: 768, 768>}, {pipeline_mode = #tpu.pipeline_mode<synchronous>, transform_indices = @transform_2, window_bounds = array<i64: 1, 768>}, {transform_indices = @transform_3, window_bounds = array<i64: 16, 768>}]} {
    %c0 = arith.constant 0 : index
    %c0_0 = arith.constant 0 : index
    %0 = vector.load %arg1[%c0, %c0_0] : memref<16x768xbf16, #tpu.memory_space<vmem>>, vector<16x768xbf16>
    %c0_1 = arith.constant 0 : index
    %c0_2 = arith.constant 0 : index
    %1 = vector.load %arg2[%c0_1, %c0_2] : memref<768x768xbf16, #tpu.memory_space<vmem>>, vector<768x768xbf16>
    %cst = arith.constant dense<0.000000e+00> : vector<16x768xf32>
    %2 = tpu.matmul %0, %1, %cst {dimension_numbers = #tpu.dot_dimension_numbers<[1], [0], [0], [1], [0, 0, 1, 1], [], []>} : vector<16x768xbf16>, vector<768x768xbf16>, vector<16x768xf32> -> vector<16x768xf32>
    %c0_3 = arith.constant 0 : index
    %c0_4 = arith.constant 0 : index
    %3 = vector.load %arg3[%c0_3, %c0_4] : memref<1x768xf32, #tpu.memory_space<vmem>>, vector<1x768xf32>
    %4 = vector.broadcast %3 : vector<1x768xf32> to vector<16x768xf32>
    %5 = arith.addf %2, %4 : vector<16x768xf32>
    %c0_5 = arith.constant 0 : index
    %c0_6 = arith.constant 0 : index
    %6 = vector.load %arg4[%c0_5, %c0_6] : memref<16x768xf32, #tpu.memory_space<vmem>>, vector<16x768xf32>
    tpu.vector_store %arg4[%c0_5, %c0_6], %5 {strides = array<i32>} : memref<16x768xf32, #tpu.memory_space<vmem>>, vector<16x768xf32>,
    return
  }
  func.func @transform_0(%arg0: i32) -> (i32, i32) {
    %c0_i32 = arith.constant 0 : i32
    %c0_i32_0 = arith.constant 0 : i32
    return %arg0, %c0_i32 : i32, i32
  }
  func.func @transform_1(%arg0: i32) -> (i32, i32) {
    %c0_i32 = arith.constant 0 : i32
    %c0_i32_0 = arith.constant 0 : i32
    %c0_i32_1 = arith.constant 0 : i32
    return %c0_i32, %c0_i32_0 : i32, i32
  }
  func.func @transform_2(%arg0: i32) -> (i32, i32) {
    %c0_i32 = arith.constant 0 : i32
    %c0_i32_0 = arith.constant 0 : i32
    %c0_i32_1 = arith.constant 0 : i32
    return %c0_i32, %c0_i32_0 : i32, i32
  }
  func.func @transform_3(%arg0: i32) -> (i32, i32) {
    %c0_i32 = arith.constant 0 : i32
    %c0_i32_0 = arith.constant 0 : i32
    return %arg0, %c0_i32 : i32, i32
  }
}

</mosaic_0001>

<bundles_post_ra>
// kernel: tpu_custom_call.1
= control target key start
LH: loop header
LB: loop body
LE: loop exit
PB: predicated region body
PF: predicated region fallthrough
CT: control target
= control target key end

     0   :  { %8 = vsyncpa [#allocation3], 0  ;;  %s4624_s0 = inlined_call_operand.hbm [shape: bf16[32,768], index: 0, kind: input, shape index: {}]   ;;  %s4625_s1 = inlined_call_operand.hbm [shape: bf16[768,768], index: 1, kind: input, shape index: {}]   ;;  %s4626_s2 = inlined_call_operand.hbm [shape: f32[1,768], index: 2, kind: input, shape index: {}]   ;;  %s4627_s3 = inlined_call_operand.hbm [shape: f32[32,768], index: 3, kind: output, shape index: {}]  }
   0x1   :  { %10 = vsyncpa [#allocation3 + $0x1], 0 }
   0x2   :  { %11 = vsyncpa [#allocation6], 0 }
   0x3   :  { %12 = vsyncpa [#allocation4], 0 }
   0x4   :  { %14 = vsyncpa [#allocation4 + $0x1], 0  ;;  %s4379_s12 = smov 0   ;;  %s4381_s13 = smov 0  }
   0x5   :  { %s4383_s14 = smov 0   ;;  %s4385_s15 = smov 0  }
   0x6 LB: > { %s4400_s16 = sadd.s32 4294967295, %s4351_s15   ;;  %s2628_s17 = sadd.s32 4294967294, %s4351_s15   ;;  %s4351_s15 = sphi %s4385_s15, %s4639_s15   ;;  %s4347_s14 = sphi %s4383_s14, %s4638_s14   ;;  %s4343_s13 = sphi %s4381_s13, %s4637_s13   ;;  %s4339_s12 = sphi %s4379_s12, %s4636_s12  }
   0x7   : > { %p40_p0 = scmp.ne.s32.totalorder %s4343_s13, %s4339_s12  ;;  %p41_p1 = scmp.eq.s32.totalorder %s4400_s16, 0 }
   0x8   : > { %p106_p2 = scmp.eq.s32.totalorder %s4400_s16, 1  ;;  %p112_p3 = scmp.eq.s32.totalorder %s2628_s17, 1 }
   0x9   : > { %p4409_p4 = por %p41_p1, %p40_p0  ;;  %p2629_p5 = scmp.ge.s32.totalorder %s4351_s15, 1 }
   0xa   : > { %p4414_p6 = por %p112_p3, %p40_p0  ;;  %p119_p7 = scmp.lt.s32.totalorder %s4351_s15, 3 }
   0xb   : > { %s130_s22 = sshll.u32 %s4625_s1, 4  ;;  %s4353_s24 = smov [#allocation5]   ;;  %s131_s22 = int_to_ptr.hbm [resolvable:$true] %s130_s22 }
   0xc   : > { %p4422_p8 = pnand %p2629_p5, %p119_p7  ;;  %s132_s25 = sshll.u32 %s4353_s24, 4  ;;  %s133_s25 = int_to_ptr.vmem [resolvable:$true] %s132_s25 }
   0xd   : > { %s145_s28 = sshll.u32 %s4626_s2, 4  ;;  %s4628_s29 = smov 384   ;;  %s146_s28 = int_to_ptr.hbm [resolvable:$true] %s145_s28 }
   0xe   : > { %p4131_p9 = pneg %p4422_p8  ;;  %s4355_s30 = smov 24  }
   0xf   : > { %s4356_s4 = smov [#allocation7]   ;;  %s4438_s6 = sadd.s32 1, %s4351_s15  }
  0x10   : > { %p4132_p10 = pnand %p4131_p9, %p41_p1  ;;  %s147_s5 = sshll.u32 %s4356_s4, 4  ;;  %s148_s5 = int_to_ptr.vmem [resolvable:$true] %s147_s5 }
  0x11   : > { %s27_s7 = sadd.s32 1, %s4347_s14  ;;  %s24_s8 = ssub.s32 %s4351_s15, %s4438_s6 }
  0x12   : > { %4134 = dma.hbm_to_vmem [thread:$0]  (!%p4132_p10), %s131_s22, 36864, %s133_s25, [#allocation6], %s4628_s29, %s4628_s29, %s4355_s30  }
  0x13   : > { %4137 = dma.hbm_to_vmem [thread:$0]  (!%p4132_p10), %s146_s28, 96, %s148_s5, [#allocation6]  }
  0x14   : > { %p34_p12 = scmp.ne.s32.totalorder %s4347_s14, %s4343_s13  ;;  %p25_p13 = scmp.eq.s32.totalorder %s24_s8, 0 }
  0x15   : > { %p35_p0 = scmp.eq.s32.totalorder %s4351_s15, 0  ;;  %p4148_p5 = scmp.lt.s32.totalorder %s4351_s15, 2 }
  0x16   : > { %p4448_p3 = por %p106_p2, %p34_p12  ;;  %s158_s11 = sand.u32 1, %s4347_s14  }
  0x17   : > { %s4454_s10 = scalar_select %p25_p13, %s4347_s14, %s27_s7  }
  0x18   : > { %p36_p7 = por %p35_p0, %p34_p12  ;;  %s4114_s17 = smul.u32 48, %s158_s11 }
  0x19   : > { %s4115_s20 = smul.u32 48, %s4351_s15  ;;  %s159_s4 = scalar_lea.sflag [#allocation3], %s158_s11 }
  0x1a   : > { %p4458_p9 = pnand %p4148_p5, %p36_p7  ;;  %s162_s26 = scalar_lea.vmem [#allocation2], %s4114_s17 }
  0x1b   : > { %s168_s25 = scalar_lea.hbm %s4624_s0, %s4115_s20  ;;  %s171_s27 = sshll.u32 %s162_s26, 4  ;;  %s172_s27 = int_to_ptr.vmem [resolvable:$true] %s171_s27 }
  0x1c   : > { %s169_s28 = sshll.u32 %s168_s25, 4  ;;  %p4255_p10 = pneg %p4458_p9  ;;  %s170_s28 = int_to_ptr.hbm [resolvable:$true] %s169_s28 }
  0x1d   : > { %s4251_s5 = sshra.s32 %s170_s28, 4  ;;  %s4258_s22 = scalar_lea.hbm %s4624_s0, 96  ;;  %s4252_s5 = int_to_ptr.hbm [resolvable:$true] %s4251_s5 }
  0x1e   : > { %s4253_s7 = scalar_lea.hbm %s4252_s5, 48  ;;  %p4259_p0 = scmp.lt.s32.totalorder %s4252_s5, %s4624_s0 }
  0x1f   : > { %p4254_p2 = scmp.ne.s32.totalorder %s4252_s5, %s4253_s7  ;;  %p4260_p5 = scmp.lt.s32.totalorder %s4258_s22, %s4253_s7 }
  0x21   : > { %p4256_p12 = pnand %p4255_p10, %p4254_p2  ;;  %p4261_p7 = por %p4260_p5, %p4259_p0 }
  0x23   : > { %p4257_p13 = pneg %p4256_p12 }
  0x25   : > { %p4262_p11 = pnand %p4261_p7, %p4257_p13 }
  0x27   : > { %4265 = shalt.err (!%p4262_p11)
}
  0x28   : > { %s4634_s11 = smov 384   ;;  %183 = sbr.rel (%p4422_p8) target bundleno = 489 (0x1e9), region = 32 }
  0x29   : > { %4141 = dma.hbm_to_vmem [thread:$0]  (!%p4458_p9), %s170_s28, 768, %s172_s27, %s159_s4, %s4634_s11, %s4634_s11, %s4355_s30  }
  0x2a   : > { %s4481_s29 = sand.u32 (!%p4422_p8), 1, %s4343_s13  }
  0x2b   : > { %s4116_s17 = smul.u32 (!%p4422_p8), 48, %s4481_s29  ;;  %s186_s25 = scalar_lea.sflag (!%p4422_p8), [#allocation3], %s4481_s29 }
  0x2d   : > { %s4485_s26 = scalar_lea.vmem [#allocation2], %s4116_s17 }
  0x2e   : > { %4326 = dma.done.wait (%p4409_p4), %s186_s25, 768  }
  0x2f   : > { %4328 = vsyncadd (%p4409_p4), %s186_s25, 4294966528 }
  0x30   : > { %4330 = dma.done.wait (%p41_p1), [#allocation6], 36960  }
  0x31   : > { %4332 = vsyncadd (%p41_p1), [#allocation6], 4294930336  ;;  %v2833_v0 = vld [vmem:[#allocation5 + $0x150] sm:$0xf]  ;;  %v3871_v1 = vld [vmem:[#allocation5 + $0x164] sm:$0xf0] }
  0x32   : > { %v3025_v2 = vld [vmem:[#allocation5 + $0x2d0] sm:$0xf]  ;;  %v2834_v3 = vor.u32 %v3871_v1, %v2833_v0  ;;  %v3919_v4 = vld [vmem:[#allocation5 + $0x2e4] sm:$0xf0]  ;;  %v2809_v11 = vld [vmem:[#allocation5 + $0x120] sm:$0xf] }
  0x33   : > { %v3217_v5 = vld [vmem:[#allocation5 + $0x450] sm:$0xf]  ;;  %v3967_v6 = vld [vmem:[#allocation5 + $0x464] sm:$0xf0]  ;;  %v3026_v7 = vor.u32 %v3919_v4, %v3025_v2  ;;  %v3865_v13 = vld [vmem:[#allocation5 + $0x134] sm:$0xf0] }
  0x34   : > { %v3218_v8 = vor.u32 %v3967_v6, %v3217_v5  ;;  %v3409_v9 = vld [vmem:[#allocation5 + $0x5d0] sm:$0xf]  ;;  %v4015_v10 = vld [vmem:[#allocation5 + $0x5e4] sm:$0xf0]  ;;  %2003 = vmatpush.bf16.msra.mxu0 %v2834_v3  ;;  %v3001_v14 = vld [vmem:[#allocation5 + $0x2a0] sm:$0xf]  ;;  %v2810_v16 = vor.u32 %v3865_v13, %v2809_v11 }
  0x35   : > { %v3410_v12 = vor.u32 %v4015_v10, %v3409_v9  ;;  %v3913_v15 = vld [vmem:[#allocation5 + $0x2b4] sm:$0xf0]  ;;  %2017 = vmatpush.bf16.msra.mxu1 %v3026_v7  ;;  %v3193_v18 = vld [vmem:[#allocation5 + $0x420] sm:$0xf]  ;;  %v2785_v23 = vld [vmem:[#allocation5 + $0xf0] sm:$0xf] }
  0x36   : > { %2031 = vmatpush.bf16.msra.mxu2 %v3218_v8  ;;  %v3002_v17 = vor.u32 %v3913_v15, %v3001_v14  ;;  %v3961_v19 = vld [vmem:[#allocation5 + $0x434] sm:$0xf0]  ;;  %v3385_v20 = vld [vmem:[#allocation5 + $0x5a0] sm:$0xf]  ;;  %v3859_v24 = vld [vmem:[#allocation5 + $0x104] sm:$0xf0] }
  0x37   : > { %2045 = vmatpush.bf16.msra.mxu3 %v3410_v12  ;;  %v3194_v21 = vor.u32 %v3961_v19, %v3193_v18  ;;  %v4009_v22 = vld [vmem:[#allocation5 + $0x5b4] sm:$0xf0]  ;;  %v2977_v26 = vld [vmem:[#allocation5 + $0x270] sm:$0xf]  ;;  %v3907_v27 = vld [vmem:[#allocation5 + $0x284] sm:$0xf0]  ;;  %v2786_v29 = vor.u32 %v3859_v24, %v2785_v23 }
  0x38   : > { %v3386_v25 = vor.u32 %v4009_v22, %v3385_v20  ;;  %v3169_v28 = vld [vmem:[#allocation5 + $0x3f0] sm:$0xf]  ;;  %2004 = vmatpush.bf16.msra.mxu0 %v2810_v16  ;;  %v3955_v30 = vld [vmem:[#allocation5 + $0x404] sm:$0xf0]  ;;  %v2978_v33 = vor.u32 %v3907_v27, %v2977_v26  ;;  %v2761_v35 = vld [vmem:[#allocation5 + $0xc0] sm:$0xf] }
  0x39   : > { %v3361_v31 = vld [vmem:[#allocation5 + $0x570] sm:$0xf]  ;;  %v4003_v32 = vld [vmem:[#allocation5 + $0x584] sm:$0xf0]  ;;  %2018 = vmatpush.bf16.msra.mxu1 %v3002_v17  ;;  %v3170_v34 = vor.u32 %v3955_v30, %v3169_v28  ;;  %v3853_v36 = vld [vmem:[#allocation5 + $0xd4] sm:$0xf0] }
  0x3a   : > { %2032 = vmatpush.bf16.msra.mxu2 %v3194_v21  ;;  %v2953_v37 = vld [vmem:[#allocation5 + $0x240] sm:$0xf]  ;;  %v3362_v38 = vor.u32 %v4003_v32, %v3361_v31  ;;  %v3901_v39 = vld [vmem:[#allocation5 + $0x254] sm:$0xf0]  ;;  %v2762_v44 = vor.u32 %v3853_v36, %v2761_v35  ;;  %v2737_v47 = vld [vmem:[#allocation5 + $0x90] sm:$0xf] }
  0x3b   : > { %2046 = vmatpush.bf16.msra.mxu3 %v3386_v25  ;;  %v3145_v40 = vld [vmem:[#allocation5 + $0x3c0] sm:$0xf]  ;;  %v3949_v41 = vld [vmem:[#allocation5 + $0x3d4] sm:$0xf0]  ;;  %v2954_v45 = vor.u32 %v3901_v39, %v2953_v37  ;;  %v3847_v48 = vld [vmem:[#allocation5 + $0xa4] sm:$0xf0] }
  0x3c   : > { %v3337_v42 = vld [vmem:[#allocation5 + $0x540] sm:$0xf]  ;;  %v3997_v43 = vld [vmem:[#allocation5 + $0x554] sm:$0xf0]  ;;  %2005 = vmatpush.bf16.msra.mxu0 %v2786_v29  ;;  %v3146_v46 = vor.u32 %v3949_v41, %v3145_v40  ;;  %v2929_v49 = vld [vmem:[#allocation5 + $0x210] sm:$0xf]  ;;  %v2738_v56 = vor.u32 %v3847_v48, %v2737_v47 }
  0x3d   : > { %2019 = vmatpush.bf16.msra.mxu1 %v2978_v33  ;;  %v3338_v50 = vor.u32 %v3997_v43, %v3337_v42  ;;  %v3895_v51 = vld [vmem:[#allocation5 + $0x224] sm:$0xf0]  ;;  %v3121_v52 = vld [vmem:[#allocation5 + $0x390] sm:$0xf]  ;;  %v2713_v59 = vld [vmem:[#allocation5 + $0x60] sm:$0xf] }
  0x3e   : > { %2033 = vmatpush.bf16.msra.mxu2 %v3170_v34  ;;  %v3943_v53 = vld [vmem:[#allocation5 + $0x3a4] sm:$0xf0]  ;;  %v3313_v54 = vld [vmem:[#allocation5 + $0x510] sm:$0xf]  ;;  %v2930_v57 = vor.u32 %v3895_v51, %v2929_v49  ;;  %v3841_v60 = vld [vmem:[#allocation5 + $0x74] sm:$0xf0] }
  0x3f   : > { %2047 = vmatpush.bf16.msra.mxu3 %v3362_v38  ;;  %v3991_v55 = vld [vmem:[#allocation5 + $0x524] sm:$0xf0]  ;;  %v3122_v58 = vor.u32 %v3943_v53, %v3121_v52  ;;  %v2905_v61 = vld [vmem:[#allocation5 + $0x1e0] sm:$0xf]  ;;  %v3889_v63 = vld [vmem:[#allocation5 + $0x1f4] sm:$0xf0]  ;;  %v2714_v4 = vor.u32 %v3841_v60, %v2713_v59 }
  0x40   : > { %2006 = vmatpush.bf16.msra.mxu0 %v2762_v44  ;;  %v3314_v62 = vor.u32 %v3991_v55, %v3313_v54  ;;  %v3097_v0 = vld [vmem:[#allocation5 + $0x360] sm:$0xf]  ;;  %v3937_v1 = vld [vmem:[#allocation5 + $0x374] sm:$0xf0]  ;;  %v2906_v5 = vor.u32 %v3889_v63, %v2905_v61  ;;  %v2689_v7 = vld [vmem:[#allocation5 + $0x30] sm:$0xf] }
  0x41   : > { %2020 = vmatpush.bf16.msra.mxu1 %v2954_v45  ;;  %v3289_v2 = vld [vmem:[#allocation5 + $0x4e0] sm:$0xf]  ;;  %v3985_v3 = vld [vmem:[#allocation5 + $0x4f4] sm:$0xf0]  ;;  %v3098_v6 = vor.u32 %v3937_v1, %v3097_v0  ;;  %v3835_v8 = vld [vmem:[#allocation5 + $0x44] sm:$0xf0] }
  0x42   : > { %2034 = vmatpush.bf16.msra.mxu2 %v3146_v46  ;;  %v2881_v9 = vld [vmem:[#allocation5 + $0x1b0] sm:$0xf]  ;;  %v3290_v10 = vor.u32 %v3985_v3, %v3289_v2  ;;  %v3883_v11 = vld [vmem:[#allocation5 + $0x1c4] sm:$0xf0]  ;;  %v2690_v16 = vor.u32 %v3835_v8, %v2689_v7  ;;  %v2665_v17 = vld [vmem:[#allocation5] sm:$0xf] }
  0x43   : > { %2048 = vmatpush.bf16.msra.mxu3 %v3338_v50  ;;  %v3073_v12 = vld [vmem:[#allocation5 + $0x330] sm:$0xf]  ;;  %v3931_v13 = vld [vmem:[#allocation5 + $0x344] sm:$0xf0]  ;;  %v3829_v18 = vld [vmem:[#allocation5 + $0x14] sm:$0xf0]  ;;  %v2882_v19 = vor.u32 %v3883_v11, %v2881_v9 }
  0x44   : > { %2007 = vmatpush.bf16.msra.mxu0 %v2738_v56  ;;  %v3265_v14 = vld [vmem:[#allocation5 + $0x4b0] sm:$0xf]  ;;  %v3979_v15 = vld [vmem:[#allocation5 + $0x4c4] sm:$0xf0]  ;;  %v3074_v20 = vor.u32 %v3931_v13, %v3073_v12  ;;  %v2857_v21 = vld [vmem:[#allocation5 + $0x180] sm:$0xf]  ;;  %v2666_v31 = vor.u32 %v3829_v18, %v2665_v17 }
  0x45   : > { %2021 = vmatpush.bf16.msra.mxu1 %v2930_v57  ;;  %v3877_v22 = vld [vmem:[#allocation5 + $0x194] sm:$0xf0]  ;;  %v3049_v23 = vld [vmem:[#allocation5 + $0x300] sm:$0xf]  ;;  %v3266_v24 = vor.u32 %v3979_v15, %v3265_v14  ;;  %v3601_v28 = vld [vmem:[#allocation5 + $0x750] sm:$0xf] }
  0x46   : > { %2035 = vmatpush.bf16.msra.mxu2 %v3122_v58  ;;  %v3925_v25 = vld [vmem:[#allocation5 + $0x314] sm:$0xf0]  ;;  %v3241_v26 = vld [vmem:[#allocation5 + $0x480] sm:$0xf]  ;;  %v4063_v29 = vld [vmem:[#allocation5 + $0x764] sm:$0xf0]  ;;  %v2858_v35 = vor.u32 %v3877_v22, %v2857_v21 }
  0x47   : > { %2049 = vmatpush.bf16.msra.mxu3 %v3314_v62  ;;  %v3973_v27 = vld [vmem:[#allocation5 + $0x494] sm:$0xf0]  ;;  %v3793_v30 = vld [vmem:[#allocation5 + $0x8d0] sm:$0xf]  ;;  %v4111_v32 = vld [vmem:[#allocation5 + $0x8e4] sm:$0xf0]  ;;  %v3050_v36 = vor.u32 %v3925_v25, %v3049_v23  ;;  %v3602_v40 = vor.u32 %v4063_v29, %v3601_v28 }
  0x48   : > { %2008 = vmatpush.bf16.msra.mxu0 %v2714_v4  ;;  %v3868_v33 = vld [vmem:[#allocation5 + $0x154] sm:$0xf]  ;;  %v2835_v34 = vld [vmem:[#allocation5 + $0x168] sm:$0xf0]  ;;  %v3242_v39 = vor.u32 %v3973_v27, %v3241_v26  ;;  %v3577_v41 = vld [vmem:[#allocation5 + $0x720] sm:$0xf]  ;;  %v3794_v42 = vor.u32 %v4111_v32, %v3793_v30 }
  0x49   : > { %2022 = vmatpush.bf16.msra.mxu1 %v2906_v5  ;;  %v3916_v37 = vld [vmem:[#allocation5 + $0x2d4] sm:$0xf]  ;;  %v3027_v38 = vld [vmem:[#allocation5 + $0x2e8] sm:$0xf0]  ;;  %v2838_v43 = vor.u32 %v3868_v33, %v2835_v34  ;;  %v4057_v44 = vld [vmem:[#allocation5 + $0x734] sm:$0xf0] }
  0x4a   : > { %2036 = vmatpush.bf16.msra.mxu2 %v3098_v6  ;;  %v3769_v45 = vld [vmem:[#allocation5 + $0x8a0] sm:$0xf]  ;;  %v4105_v46 = vld [vmem:[#allocation5 + $0x8b4] sm:$0xf0]  ;;  %v3030_v47 = vor.u32 %v3916_v37, %v3027_v38  ;;  %v3862_v48 = vld [vmem:[#allocation5 + $0x124] sm:$0xf]  ;;  %v3578_v54 = vor.u32 %v4057_v44, %v3577_v41 }
  0x4b   : > { %2050 = vmatpush.bf16.msra.mxu3 %v3290_v10  ;;  %v2811_v49 = vld [vmem:[#allocation5 + $0x138] sm:$0xf0]  ;;  %v3910_v50 = vld [vmem:[#allocation5 + $0x2a4] sm:$0xf]  ;;  %v2641_v52 = vld [vmem:[%s4485_s26] sm:$0xf]  ;;  %v3770_v58 = vor.u32 %v4105_v46, %v3769_v45 }
  0x4c   : > { %2009 = vmatpush.bf16.msra.mxu0 %v2690_v16  ;;  %v3003_v51 = vld [vmem:[#allocation5 + $0x2b8] sm:$0xf0]  ;;  %v3823_v53 = vld [vmem:[%s4485_s26 + $0x14] sm:$0xf0]  ;;  %v3553_v55 = vld [vmem:[#allocation5 + $0x6f0] sm:$0xf]  ;;  %v2814_v59 = vor.u32 %v3862_v48, %v2811_v49 }
  0x4d   : > { %2023 = vmatpush.bf16.msra.mxu1 %v2882_v19  ;;  %v4051_v56 = vld [vmem:[#allocation5 + $0x704] sm:$0xf0]  ;;  %v4497_v57 = vor.u32 %v3823_v53, %v2641_v52  ;;  %v3745_v60 = vld [vmem:[#allocation5 + $0x870] sm:$0xf]  ;;  %v3856_v62 = vld [vmem:[#allocation5 + $0xf4] sm:$0xf]  ;;  %v3006_v63 = vor.u32 %v3910_v50, %v3003_v51 }
  0x4e   : > { %2037 = vmatpush.bf16.msra.mxu2 %v3074_v20  ;;  %v4099_v61 = vld [vmem:[#allocation5 + $0x884] sm:$0xf0]  ;;  %v2787_v0 = vld [vmem:[#allocation5 + $0x108] sm:$0xf0]  ;;  %v3820_v1 = vld [vmem:[%s4485_s26 + $0x4] sm:$0xf]  ;;  %v3554_v7 = vor.u32 %v4051_v56, %v3553_v55 }
  0x4f   : > { %2051 = vmatpush.bf16.msra.mxu3 %v3266_v24  ;;  %v2643_v2 = vld [vmem:[%s4485_s26 + $0x18] sm:$0xf0]  ;;  %v3904_v3 = vld [vmem:[#allocation5 + $0x274] sm:$0xf]  ;;  %v3529_v5 = vld [vmem:[#allocation5 + $0x6c0] sm:$0xf]  ;;  %v3746_v11 = vor.u32 %v4099_v61, %v3745_v60  ;;  %v2790_v12 = vor.u32 %v3856_v62, %v2787_v0 }
  0x50   : > { %2010 = vmatpush.bf16.msra.mxu0 %v2666_v31  ;;  %v2979_v4 = vld [vmem:[#allocation5 + $0x288] sm:$0xf0]  ;;  %v4502_v6 = vor.u32 %v3820_v1, %v2643_v2  ;;  %v4045_v8 = vld [vmem:[#allocation5 + $0x6d4] sm:$0xf0]  ;;  %v3721_v9 = vld [vmem:[#allocation5 + $0x840] sm:$0xf] }
  0x51   : > { %2024 = vmatpush.bf16.msra.mxu1 %v2858_v35  ;;  %v4093_v10 = vld [vmem:[#allocation5 + $0x854] sm:$0xf0]  ;;  %v3850_v13 = vld [vmem:[#allocation5 + $0xc4] sm:$0xf]  ;;  %v2763_v14 = vld [vmem:[#allocation5 + $0xd8] sm:$0xf0]  ;;  %v2982_v16 = vor.u32 %v3904_v3, %v2979_v4  ;;  %v3530_v24 = vor.u32 %v4045_v8, %v3529_v5 }
  0x52   : > { %2038 = vmatpush.bf16.msra.mxu2 %v3050_v36  ;;  %v2649_v15 = vld [vmem:[%s4485_s26 + $0x8] sm:$0xf]  ;;  %v3824_v17 = vld [vmem:[%s4485_s26 + $0x1c] sm:$0xf0]  ;;  %v3821_v18 = vld [vmem:[%s4485_s26 + $0xc] sm:$0xf]  ;;  %v3722_v25 = vor.u32 %v4093_v10, %v3721_v9  ;;  %v2766_v26 = vor.u32 %v3850_v13, %v2763_v14 }
  0x53   : > { %2052 = vmatpush.bf16.msra.mxu3 %v3242_v39  ;;  %2011 = vmatmul.bf16.vlgmr.msra.gmra.mxu0 %v4497_v57  ;;  %v2651_v19 = vld [vmem:[%s4485_s26 + $0x20] sm:$0xf0]  ;;  %v2955_v21 = vld [vmem:[#allocation5 + $0x258] sm:$0xf0]  ;;  %v4509_v22 = vor.u32 %v3824_v17, %v2649_v15  ;;  %v3505_v27 = vld [vmem:[#allocation5 + $0x690] sm:$0xf] }
  0x54   : > { %2059 = vmatpush.bf16.msrb.mxu0 %v3602_v40  ;;  %2025 = vmatmul.bf16.vlgmr.msra.gmra.mxu1 %v4502_v6  ;;  %v3898_v20 = vld [vmem:[#allocation5 + $0x244] sm:$0xf]  ;;  %v4511_v23 = vor.u32 %v3821_v18, %v2651_v19  ;;  %v4039_v28 = vld [vmem:[#allocation5 + $0x6a4] sm:$0xf0]  ;;  %v3697_v29 = vld [vmem:[#allocation5 + $0x810] sm:$0xf] }
  0x55   : > { %2073 = vmatpush.bf16.msrb.mxu1 %v3794_v42  ;;  %v2958_v30 = vor.u32 %v3898_v20, %v2955_v21  ;;  %v4087_v31 = vld [vmem:[#allocation5 + $0x824] sm:$0xf0]  ;;  %v3844_v32 = vld [vmem:[#allocation5 + $0x94] sm:$0xf]  ;;  %v2739_v33 = vld [vmem:[#allocation5 + $0xa8] sm:$0xf0]  ;;  %2039 = vmatmul.bf16.vlgmr.msra.gmra.mxu2 %v4509_v22  ;;  %v3506_v36 = vor.u32 %v4039_v28, %v3505_v27 }
  0x56   : > { %2087 = vmatpush.bf16.msrb.mxu2 %v2838_v43  ;;  %v3892_v34 = vld [vmem:[#allocation5 + $0x214] sm:$0xf]  ;;  %v2931_v35 = vld [vmem:[#allocation5 + $0x228] sm:$0xf0]  ;;  %2053 = vmatmul.bf16.vlgmr.msra.gmra.mxu3 %v4511_v23  ;;  %v3698_v37 = vor.u32 %v4087_v31, %v3697_v29  ;;  %v2742_v38 = vor.u32 %v3844_v32, %v2739_v33  ;;  %v3481_v39 = vld [vmem:[#allocation5 + $0x660] sm:$0xf] }
  0x57   : > { %2101 = vmatpush.bf16.msrb.mxu3 %v3030_v47  ;;  %v4033_v40 = vld [vmem:[#allocation5 + $0x674] sm:$0xf0]  ;;  %v3673_v41 = vld [vmem:[#allocation5 + $0x7e0] sm:$0xf]  ;;  %v2934_v42 = vor.u32 %v3892_v34, %v2931_v35  ;;  %v3838_v44 = vld [vmem:[#allocation5 + $0x64] sm:$0xf] }
  0x58   : > { %2060 = vmatpush.bf16.msrb.mxu0 %v3578_v54  ;;  %v4081_v43 = vld [vmem:[#allocation5 + $0x7f4] sm:$0xf0]  ;;  %v2715_v45 = vld [vmem:[#allocation5 + $0x78] sm:$0xf0]  ;;  %v3886_v46 = vld [vmem:[#allocation5 + $0x1e4] sm:$0xf]  ;;  %v3482_v48 = vor.u32 %v4033_v40, %v3481_v39 }
  0x59   : > { %2074 = vmatpush.bf16.msrb.mxu1 %v3770_v58  ;;  %v2907_v47 = vld [vmem:[#allocation5 + $0x1f8] sm:$0xf0]  ;;  %v3674_v49 = vor.u32 %v4081_v43, %v3673_v41  ;;  %v2718_v50 = vor.u32 %v3838_v44, %v2715_v45  ;;  %v3457_v51 = vld [vmem:[#allocation5 + $0x630] sm:$0xf]  ;;  %v4027_v52 = vld [vmem:[#allocation5 + $0x644] sm:$0xf0] }
  0x5a   : > { %2088 = vmatpush.bf16.msrb.mxu2 %v2814_v59  ;;  %v3649_v53 = vld [vmem:[#allocation5 + $0x7b0] sm:$0xf]  ;;  %v2910_v54 = vor.u32 %v3886_v46, %v2907_v47  ;;  %v4075_v55 = vld [vmem:[#allocation5 + $0x7c4] sm:$0xf0]  ;;  %v3832_v56 = vld [vmem:[#allocation5 + $0x34] sm:$0xf]  ;;  %v3458_v61 = vor.u32 %v4027_v52, %v3457_v51 }
  0x5b   : > { %2102 = vmatpush.bf16.msrb.mxu3 %v3006_v63  ;;  %v2691_v58 = vld [vmem:[#allocation5 + $0x48] sm:$0xf0]  ;;  %v3880_v59 = vld [vmem:[#allocation5 + $0x1b4] sm:$0xf]  ;;  %v3433_v62 = vld [vmem:[#allocation5 + $0x600] sm:$0xf]  ;;  %v3650_v1 = vor.u32 %v4075_v55, %v3649_v53 }
  0x5c   : > { %2061 = vmatpush.bf16.msrb.mxu0 %v3554_v7  ;;  %v2883_v60 = vld [vmem:[#allocation5 + $0x1c8] sm:$0xf0]  ;;  %v4021_v63 = vld [vmem:[#allocation5 + $0x614] sm:$0xf0]  ;;  %v3625_v0 = vld [vmem:[#allocation5 + $0x780] sm:$0xf]  ;;  %v2694_v2 = vor.u32 %v3832_v56, %v2691_v58 }
  0x5d   : > { %2075 = vmatpush.bf16.msrb.mxu1 %v3746_v11  ;;  %v4069_v3 = vld [vmem:[#allocation5 + $0x794] sm:$0xf0]  ;;  %v3826_v4 = vld [vmem:[#allocation5 + $0x4] sm:$0xf]  ;;  %v2667_v5 = vld [vmem:[#allocation5 + $0x18] sm:$0xf0]  ;;  %v2886_v7 = vor.u32 %v3880_v59, %v2883_v60  ;;  %v3434_v14 = vor.u32 %v4021_v63, %v3433_v62 }
  0x5e   : > { %2089 = vmatpush.bf16.msrb.mxu2 %v2790_v12  ;;  %v3874_v8 = vld [vmem:[#allocation5 + $0x184] sm:$0xf]  ;;  %v2859_v9 = vld [vmem:[#allocation5 + $0x198] sm:$0xf0]  ;;  %v3964_v10 = vld [vmem:[#allocation5 + $0x454] sm:$0xf]  ;;  %v3626_v18 = vor.u32 %v4069_v3, %v3625_v0  ;;  %v2670_v19 = vor.u32 %v3826_v4, %v2667_v5 }
  0x5f   : > { %2103 = vmatpush.bf16.msrb.mxu3 %v2982_v16  ;;  %v3219_v11 = vld [vmem:[#allocation5 + $0x468] sm:$0xf0]  ;;  %v4012_v12 = vld [vmem:[#allocation5 + $0x5d4] sm:$0xf]  ;;  %v2657_v21 = vld [vmem:[%s4485_s26 + $0x10] sm:$0xf] }
  0x60   : > { %2062 = vmatpush.bf16.msrb.mxu0 %v3530_v24  ;;  %v3411_v13 = vld [vmem:[#allocation5 + $0x5e8] sm:$0xf0]  ;;  %v4060_v15 = vld [vmem:[#allocation5 + $0x754] sm:$0xf]  ;;  %v3825_v24 = vld [vmem:[%s4485_s26 + $0x24] sm:$0xf0] }
  0x61   : > { %2076 = vmatpush.bf16.msrb.mxu1 %v3722_v25  ;;  %v3603_v16 = vld [vmem:[#allocation5 + $0x768] sm:$0xf0]  ;;  %v4108_v17 = vld [vmem:[#allocation5 + $0x8d4] sm:$0xf]  ;;  %v2862_v25 = vor.u32 %v3874_v8, %v2859_v9  ;;  %v3414_v29 = vor.u32 %v4012_v12, %v3411_v13  ;;  %v3958_v31 = vld [vmem:[#allocation5 + $0x424] sm:$0xf]  ;;  %v4519_v35 = vor.u32 %v3825_v24, %v2657_v21 }
  0x62   : > { %2090 = vmatpush.bf16.msrb.mxu2 %v2766_v26  ;;  %v3795_v20 = vld [vmem:[#allocation5 + $0x8e8] sm:$0xf0]  ;;  %v3222_v26 = vor.u32 %v3964_v10, %v3219_v11  ;;  %v3822_v27 = vld [vmem:[%s4485_s26 + $0x14] sm:$0xf]  ;;  %v3195_v32 = vld [vmem:[#allocation5 + $0x438] sm:$0xf0] }
  0x63   : > { %2104 = vmatpush.bf16.msrb.mxu3 %v2958_v30  ;;  %v2659_v28 = vld [vmem:[%s4485_s26 + $0x28] sm:$0xf0]  ;;  %v3606_v30 = vor.u32 %v4060_v15, %v3603_v16  ;;  %v4006_v33 = vld [vmem:[#allocation5 + $0x5a4] sm:$0xf]  ;;  %v3798_v34 = vor.u32 %v4108_v17, %v3795_v20  ;;  %v3952_v45 = vld [vmem:[#allocation5 + $0x3f4] sm:$0xf] }
  0x64   : > { %2063 = vmatpush.bf16.msrb.mxu0 %v3506_v36  ;;  %v3387_v36 = vld [vmem:[#allocation5 + $0x5b8] sm:$0xf0]  ;;  %v4521_v39 = vor.u32 %v3822_v27, %v2659_v28  ;;  %v4102_v40 = vld [vmem:[#allocation5 + $0x8a4] sm:$0xf]  ;;  %v3171_v46 = vld [vmem:[#allocation5 + $0x408] sm:$0xf0] }
  0x65   : > { %2077 = vmatpush.bf16.msrb.mxu1 %v3698_v37  ;;  %v4054_v37 = vld [vmem:[#allocation5 + $0x724] sm:$0xf]  ;;  %v3771_v41 = vld [vmem:[#allocation5 + $0x8b8] sm:$0xf0]  ;;  %v3390_v43 = vor.u32 %v4006_v33, %v3387_v36  ;;  %v4000_v47 = vld [vmem:[#allocation5 + $0x574] sm:$0xf] }
  0x66   : > { %2091 = vmatpush.bf16.msrb.mxu2 %v2742_v38  ;;  %v3579_v38 = vld [vmem:[#allocation5 + $0x738] sm:$0xf0]  ;;  %v3555_v51 = vld [vmem:[#allocation5 + $0x708] sm:$0xf0]  ;;  %v4096_v52 = vld [vmem:[#allocation5 + $0x874] sm:$0xf] }
  0x67   : > { %2105 = vmatpush.bf16.msrb.mxu3 %v2934_v42  ;;  %v3198_v42 = vor.u32 %v3958_v31, %v3195_v32  ;;  %v3582_v44 = vor.u32 %v4054_v37, %v3579_v38  ;;  %v3747_v53 = vld [vmem:[#allocation5 + $0x888] sm:$0xf0]  ;;  %v3946_v58 = vld [vmem:[#allocation5 + $0x3c4] sm:$0xf]  ;;  %v3147_v59 = vld [vmem:[#allocation5 + $0x3d8] sm:$0xf0] }
  0x68   : > { %2064 = vmatpush.bf16.msrb.mxu0 %v3482_v48  ;;  %v3774_v48 = vor.u32 %v4102_v40, %v3771_v41  ;;  %v3994_v60 = vld [vmem:[#allocation5 + $0x544] sm:$0xf]  ;;  %v3339_v62 = vld [vmem:[#allocation5 + $0x558] sm:$0xf0]  ;;  %v3150_v3 = vor.u32 %v3946_v58, %v3147_v59  ;;  %v3123_v8 = vld [vmem:[#allocation5 + $0x3a8] sm:$0xf0] }
  0x69   : > { %2078 = vmatpush.bf16.msrb.mxu1 %v3674_v49  ;;  %v3363_v49 = vld [vmem:[#allocation5 + $0x588] sm:$0xf0]  ;;  %v4042_v63 = vld [vmem:[#allocation5 + $0x6c4] sm:$0xf]  ;;  %v3531_v0 = vld [vmem:[#allocation5 + $0x6d8] sm:$0xf0]  ;;  %v3342_v4 = vor.u32 %v3994_v60, %v3339_v62 }
  0x6a   : > { %2092 = vmatpush.bf16.msrb.mxu2 %v2718_v50  ;;  %v4048_v50 = vld [vmem:[#allocation5 + $0x6f4] sm:$0xf]  ;;  %v3366_v55 = vor.u32 %v4000_v47, %v3363_v49  ;;  %v3534_v5 = vor.u32 %v4042_v63, %v3531_v0  ;;  %v3315_v11 = vld [vmem:[#allocation5 + $0x528] sm:$0xf0]  ;;  %v3099_v20 = vld [vmem:[#allocation5 + $0x378] sm:$0xf0] }
  0x6b   : > { %2106 = vmatpush.bf16.msrb.mxu3 %v2910_v54  ;;  %v3174_v54 = vor.u32 %v3952_v45, %v3171_v46  ;;  %v3558_v56 = vor.u32 %v4048_v50, %v3555_v51  ;;  %v3988_v9 = vld [vmem:[#allocation5 + $0x514] sm:$0xf]  ;;  %v3507_v13 = vld [vmem:[#allocation5 + $0x6a8] sm:$0xf0]  ;;  %v3982_v21 = vld [vmem:[#allocation5 + $0x4e4] sm:$0xf] }
  0x6c   : > { %2065 = vmatpush.bf16.msrb.mxu0 %v3458_v61  ;;  %v3750_v61 = vor.u32 %v4096_v52, %v3747_v53  ;;  %v4036_v12 = vld [vmem:[#allocation5 + $0x694] sm:$0xf]  ;;  %v3699_v15 = vld [vmem:[#allocation5 + $0x828] sm:$0xf0]  ;;  %v3318_v17 = vor.u32 %v3988_v9, %v3315_v11  ;;  %v3483_v27 = vld [vmem:[#allocation5 + $0x678] sm:$0xf0] }
  0x6d   : > { %2079 = vmatpush.bf16.msrb.mxu1 %v3650_v1  ;;  %v4090_v1 = vld [vmem:[#allocation5 + $0x844] sm:$0xf]  ;;  %v3928_v33 = vld [vmem:[#allocation5 + $0x334] sm:$0xf]  ;;  %v3267_v38 = vld [vmem:[#allocation5 + $0x4c8] sm:$0xf0] }
  0x6e   : > { %2093 = vmatpush.bf16.msrb.mxu2 %v2694_v2  ;;  %v3723_v2 = vld [vmem:[#allocation5 + $0x858] sm:$0xf0]  ;;  %v4078_v28 = vld [vmem:[#allocation5 + $0x7e4] sm:$0xf]  ;;  %v3976_v36 = vld [vmem:[#allocation5 + $0x4b4] sm:$0xf] }
  0x6f   : > { %2107 = vmatpush.bf16.msrb.mxu3 %v2886_v7  ;;  %v3940_v7 = vld [vmem:[#allocation5 + $0x394] sm:$0xf]  ;;  %v3726_v10 = vor.u32 %v4090_v1, %v3723_v2  ;;  %v3459_v41 = vld [vmem:[#allocation5 + $0x648] sm:$0xf0]  ;;  %v3922_v45 = vld [vmem:[#allocation5 + $0x304] sm:$0xf]  ;;  %v3270_v47 = vor.u32 %v3976_v36, %v3267_v38 }
  0x70   : > { %2066 = vmatpush.bf16.msrb.mxu0 %v3434_v14  ;;  %v4084_v14 = vld [vmem:[#allocation5 + $0x814] sm:$0xf]  ;;  %v3126_v16 = vor.u32 %v3940_v7, %v3123_v8  ;;  %v3051_v46 = vld [vmem:[#allocation5 + $0x318] sm:$0xf0]  ;;  %v3970_v49 = vld [vmem:[#allocation5 + $0x484] sm:$0xf] }
  0x71   : > { %2080 = vmatpush.bf16.msrb.mxu1 %v3626_v18  ;;  %v3510_v18 = vor.u32 %v4036_v12, %v3507_v13  ;;  %v3702_v24 = vor.u32 %v4084_v14, %v3699_v15  ;;  %v4024_v40 = vld [vmem:[#allocation5 + $0x634] sm:$0xf]  ;;  %v3243_v50 = vld [vmem:[#allocation5 + $0x498] sm:$0xf0]  ;;  %v4018_v51 = vld [vmem:[#allocation5 + $0x604] sm:$0xf]  ;;  %v3054_v60 = vor.u32 %v3922_v45, %v3051_v46 }
  0x72   : > { %2094 = vmatpush.bf16.msrb.mxu2 %v2670_v19  ;;  %v3934_v19 = vld [vmem:[#allocation5 + $0x364] sm:$0xf]  ;;  %v3435_v53 = vld [vmem:[#allocation5 + $0x618] sm:$0xf0]  ;;  %v3872_v58 = vld [vmem:[#allocation5 + $0x16c] sm:$0xf0]  ;;  %v3246_v0 = vor.u32 %v3970_v49, %v3243_v50 }
  0x73   : > { %2108 = vmatpush.bf16.msrb.mxu3 %v2862_v25  ;;  %2067 = vmatmul.bf16.vlgmr.msrb.gmra.mxu0 %v4519_v35  ;;  %v3291_v25 = vld [vmem:[#allocation5 + $0x4f8] sm:$0xf0]  ;;  %v3033_v59 = vld [vmem:[#allocation5 + $0x2d8] sm:$0xf]  ;;  %v3968_v63 = vld [vmem:[#allocation5 + $0x46c] sm:$0xf0]  ;;  %v3438_v1 = vor.u32 %v4018_v51, %v3435_v53 }
  0x74   : > { %2115 = vmatpush.bf16.msra.mxu0 %v3222_v26  ;;  %2081 = vmatmul.bf16.vlgmr.msrb.gmra.mxu1 %v4521_v39  ;;  %v4030_v26 = vld [vmem:[#allocation5 + $0x664] sm:$0xf]  ;;  %v3294_v31 = vor.u32 %v3982_v21, %v3291_v25  ;;  %v3225_v62 = vld [vmem:[#allocation5 + $0x458] sm:$0xf]  ;;  %v2817_v9 = vld [vmem:[#allocation5 + $0x128] sm:$0xf] }
  0x75   : > { %2129 = vmatpush.bf16.msra.mxu1 %v3414_v29  ;;  %2095 = vmatmul.bf16.vlgmr.msrb.gmra.mxu2 %v4497_v57  ;;  %v3675_v29 = vld [vmem:[#allocation5 + $0x7f8] sm:$0xf0]  ;;  %v3486_v32 = vor.u32 %v4030_v26, %v3483_v27  ;;  %v3417_v2 = vld [vmem:[#allocation5 + $0x5d8] sm:$0xf]  ;;  %v3226_v8 = vor.u32 %v3968_v63, %v3225_v62  ;;  %v3009_v11 = vld [vmem:[#allocation5 + $0x2a8] sm:$0xf] }
  0x76   : > { %2143 = vmatpush.bf16.msra.mxu2 %v3606_v30  ;;  %2109 = vmatmul.bf16.vlgmr.msrb.gmra.mxu3 %v4502_v6  ;;  %v3102_v30 = vor.u32 %v3934_v19, %v3099_v20  ;;  %v3678_v37 = vor.u32 %v4078_v28, %v3675_v29  ;;  %v3914_v13 = vld [vmem:[#allocation5 + $0x2bc] sm:$0xf0]  ;;  %v3201_v14 = vld [vmem:[#allocation5 + $0x428] sm:$0xf]  ;;  %v2793_v21 = vld [vmem:[#allocation5 + $0xf8] sm:$0xf] }
  0x77   : > { %2157 = vmatpush.bf16.msra.mxu3 %v3798_v34  ;;  %v3075_v34 = vld [vmem:[#allocation5 + $0x348] sm:$0xf0]  ;;  %v3962_v15 = vld [vmem:[#allocation5 + $0x43c] sm:$0xf0]  ;;  %v3010_v19 = vor.u32 %v3914_v13, %v3009_v11  ;;  %v2985_v25 = vld [vmem:[#allocation5 + $0x278] sm:$0xf] }
  0x78   : > { %2116 = vmatpush.bf16.msra.mxu0 %v3198_v42  ;;  %v4072_v42 = vld [vmem:[#allocation5 + $0x7b4] sm:$0xf]  ;;  %v3202_v20 = vor.u32 %v3962_v15, %v3201_v14  ;;  %v3908_v27 = vld [vmem:[#allocation5 + $0x28c] sm:$0xf0]  ;;  %v3177_v28 = vld [vmem:[#allocation5 + $0x3f8] sm:$0xf] }
  0x79   : > { %2130 = vmatpush.bf16.msra.mxu1 %v3390_v43  ;;  %v3651_v43 = vld [vmem:[#allocation5 + $0x7c8] sm:$0xf0]  ;;  %v3956_v29 = vld [vmem:[#allocation5 + $0x40c] sm:$0xf0]  ;;  %v2769_v36 = vld [vmem:[#allocation5 + $0xc8] sm:$0xf] }
  0x7a   : > { %2144 = vmatpush.bf16.msra.mxu2 %v3582_v44  ;;  %v3078_v44 = vor.u32 %v3928_v33, %v3075_v34  ;;  %v3654_v52 = vor.u32 %v4072_v42, %v3651_v43  ;;  %v2986_v33 = vor.u32 %v3908_v27, %v2985_v25  ;;  %v3178_v34 = vor.u32 %v3956_v29, %v3177_v28  ;;  %v2961_v38 = vld [vmem:[#allocation5 + $0x248] sm:$0xf]  ;;  %v3950_v43 = vld [vmem:[#allocation5 + $0x3dc] sm:$0xf0]  ;;  %v2745_v49 = vld [vmem:[#allocation5 + $0x98] sm:$0xf] }
  0x7b   : > { %2158 = vmatpush.bf16.msra.mxu3 %v3774_v48  ;;  %v3462_v48 = vor.u32 %v4024_v40, %v3459_v41  ;;  %v3902_v41 = vld [vmem:[#allocation5 + $0x25c] sm:$0xf0]  ;;  %v3153_v42 = vld [vmem:[#allocation5 + $0x3c8] sm:$0xf]  ;;  %v3848_v50 = vld [vmem:[#allocation5 + $0xac] sm:$0xf0] }
  0x7c   : > { %2117 = vmatpush.bf16.msra.mxu0 %v3174_v54  ;;  %v4066_v54 = vld [vmem:[#allocation5 + $0x784] sm:$0xf]  ;;  %v3998_v45 = vld [vmem:[#allocation5 + $0x55c] sm:$0xf0]  ;;  %v2937_v51 = vld [vmem:[#allocation5 + $0x218] sm:$0xf] }
  0x7d   : > { %2131 = vmatpush.bf16.msra.mxu1 %v3366_v55  ;;  %v3627_v55 = vld [vmem:[#allocation5 + $0x798] sm:$0xf0]  ;;  %v3896_v53 = vld [vmem:[#allocation5 + $0x22c] sm:$0xf0]  ;;  %v2721_v62 = vld [vmem:[#allocation5 + $0x68] sm:$0xf] }
  0x7e   : > { %2145 = vmatpush.bf16.msra.mxu2 %v3558_v56  ;;  %v2841_v56 = vld [vmem:[#allocation5 + $0x158] sm:$0xf]  ;;  %v3842_v63 = vld [vmem:[#allocation5 + $0x7c] sm:$0xf0]  ;;  %v3884_v15 = vld [vmem:[#allocation5 + $0x1cc] sm:$0xf0] }
  0x7f   : > { %2159 = vmatpush.bf16.msra.mxu3 %v3750_v61  ;;  %v3920_v61 = vld [vmem:[#allocation5 + $0x2ec] sm:$0xf0]  ;;  %v2697_v11 = vld [vmem:[#allocation5 + $0x38] sm:$0xf]  ;;  %v2865_v27 = vld [vmem:[#allocation5 + $0x188] sm:$0xf] }
  0x80   : > { %2118 = vmatpush.bf16.msra.mxu0 %v3150_v3  ;;  %v4016_v3 = vld [vmem:[#allocation5 + $0x5ec] sm:$0xf0]  ;;  %v3034_v7 = vor.u32 %v3920_v61, %v3033_v59  ;;  %v2746_v59 = vor.u32 %v3848_v50, %v2745_v49  ;;  %v2889_v13 = vld [vmem:[#allocation5 + $0x1b8] sm:$0xf]  ;;  %v3878_v28 = vld [vmem:[#allocation5 + $0x19c] sm:$0xf0] }
  0x81   : > { %2132 = vmatpush.bf16.msra.mxu1 %v3342_v4  ;;  %v3630_v4 = vor.u32 %v4066_v54, %v3627_v55  ;;  %v3418_v12 = vor.u32 %v4016_v3, %v3417_v2  ;;  %v3129_v54 = vld [vmem:[#allocation5 + $0x398] sm:$0xf]  ;;  %v3944_v55 = vld [vmem:[#allocation5 + $0x3ac] sm:$0xf0]  ;;  %v3890_v2 = vld [vmem:[#allocation5 + $0x1fc] sm:$0xf0]  ;;  %v2890_v25 = vor.u32 %v3884_v15, %v2889_v13 }
  0x82   : > { %2146 = vmatpush.bf16.msra.mxu2 %v3534_v5  ;;  %v2842_v5 = vor.u32 %v3872_v58, %v2841_v56  ;;  %v3321_v56 = vld [vmem:[#allocation5 + $0x518] sm:$0xf]  ;;  %v3992_v58 = vld [vmem:[#allocation5 + $0x52c] sm:$0xf0]  ;;  %v3130_v61 = vor.u32 %v3944_v55, %v3129_v54  ;;  %v3105_v3 = vld [vmem:[#allocation5 + $0x368] sm:$0xf] }
  0x83   : > { %2160 = vmatpush.bf16.msra.mxu3 %v3726_v10  ;;  %v3866_v10 = vld [vmem:[#allocation5 + $0x13c] sm:$0xf0]  ;;  %v3057_v29 = vld [vmem:[#allocation5 + $0x308] sm:$0xf]  ;;  %s4117_s18 = smul.u32 96, %s4481_s29  ;;  %s4301_s20 = scalar_lea.hbm %s4627_s3, 192 }
  0x84   : > { %2119 = vmatpush.bf16.msra.mxu0 %v3126_v16  ;;  %v3393_v16 = vld [vmem:[#allocation5 + $0x5a8] sm:$0xf]  ;;  %v4106_v55 = vld [vmem:[#allocation5 + $0x8bc] sm:$0xf0]  ;;  %s4118_s30 = smul.u32 96, %s4400_s16  ;;  %s2520_s16 = scalar_lea.sflag [#allocation4], %s4481_s29 }
  0x85   : > { %2133 = vmatpush.bf16.msra.mxu1 %v3318_v17  ;;  %v4010_v17 = vld [vmem:[#allocation5 + $0x5bc] sm:$0xf0]  ;;  %v3537_v13 = vld [vmem:[#allocation5 + $0x6c8] sm:$0xf]  ;;  %s4553_s23 = scalar_lea.vmem [#allocation8], %s4117_s18 }
  0x86   : > { %2147 = vmatpush.bf16.msra.mxu2 %v3510_v18  ;;  %v2818_v18 = vor.u32 %v3866_v10, %v2817_v9  ;;  %v3394_v26 = vor.u32 %v4010_v17, %v3393_v16  ;;  %v3081_v16 = vld [vmem:[#allocation5 + $0x338] sm:$0xf]  ;;  %v3932_v17 = vld [vmem:[#allocation5 + $0x34c] sm:$0xf0]  ;;  %v3729_v15 = vld [vmem:[#allocation5 + $0x848] sm:$0xf]  ;;  %s2532_s28 = scalar_lea.hbm %s4627_s3, %s4118_s30 }
  0x87   : > { %2161 = vmatpush.bf16.msra.mxu3 %v3702_v24  ;;  %v3860_v24 = vld [vmem:[#allocation5 + $0x10c] sm:$0xf0]  ;;  %s2533_s4 = sshll.u32 %s4553_s23, 4  ;;  %s2535_s5 = sshll.u32 %s2532_s28, 4  ;;  %s2534_s4 = int_to_ptr.vmem [resolvable:$true] %s2533_s4  ;;  %s2536_s5 = int_to_ptr.hbm [resolvable:$true] %s2535_s5 }
  0x88   : > { %2120 = vmatpush.bf16.msra.mxu0 %v3102_v30  ;;  %v3369_v30 = vld [vmem:[#allocation5 + $0x578] sm:$0xf]  ;;  %s4295_s7 = sshra.s32 %s2536_s5, 4  ;;  %s4296_s7 = int_to_ptr.hbm [resolvable:$true] %s4295_s7 }
  0x89   : > { %2134 = vmatpush.bf16.msra.mxu1 %v3294_v31  ;;  %v4004_v31 = vld [vmem:[#allocation5 + $0x58c] sm:$0xf0]  ;;  %s4297_s8 = scalar_lea.hbm %s4296_s7, 96  ;;  %p4302_p11 = scmp.lt.s32.totalorder %s4296_s7, %s4627_s3 }
  0x8a   : > { %2148 = vmatpush.bf16.msra.mxu2 %v3486_v32  ;;  %v2794_v32 = vor.u32 %v3860_v24, %v2793_v21  ;;  %v3370_v40 = vor.u32 %v4004_v31, %v3369_v30  ;;  %v2673_v21 = vld [vmem:[#allocation5 + $0x8] sm:$0xf]  ;;  %v3830_v24 = vld [vmem:[#allocation5 + $0x1c] sm:$0xf0]  ;;  %p4298_p1 = scmp.ne.s32.totalorder %s4296_s7, %s4297_s8  ;;  %p4303_p9 = scmp.lt.s32.totalorder %s4301_s20, %s4297_s8 }
  0x8b   : > { %2162 = vmatpush.bf16.msra.mxu3 %v3678_v37  ;;  %v3854_v37 = vld [vmem:[#allocation5 + $0xdc] sm:$0xf0] }
  0x8c   : > { %2121 = vmatpush.bf16.msra.mxu0 %v3078_v44  ;;  %v3345_v44 = vld [vmem:[#allocation5 + $0x548] sm:$0xf]  ;;  %v2770_v46 = vor.u32 %v3854_v37, %v2769_v36  ;;  %v3926_v31 = vld [vmem:[#allocation5 + $0x31c] sm:$0xf0]  ;;  %v4064_v36 = vld [vmem:[#allocation5 + $0x76c] sm:$0xf0]  ;;  %p4299_p4 = pnand %p4298_p1, %p4448_p3  ;;  %p4304_p2 = por %p4303_p9, %p4302_p11 }
  0x8d   : > { %2135 = vmatpush.bf16.msra.mxu1 %v3270_v47  ;;  %v2962_v47 = vor.u32 %v3902_v41, %v2961_v38  ;;  %v3801_v37 = vld [vmem:[#allocation5 + $0x8d8] sm:$0xf]  ;;  %v2674_v38 = vor.u32 %v3830_v24, %v2673_v21  ;;  %v3869_v41 = vld [vmem:[#allocation5 + $0x15c] sm:$0xf]  ;;  %v2963_v21 = vld [vmem:[#allocation5 + $0x260] sm:$0xf0] }
  0x8e   : > { %2149 = vmatpush.bf16.msra.mxu2 %v3462_v48  ;;  %v3154_v48 = vor.u32 %v3950_v43, %v3153_v42  ;;  %v2843_v42 = vld [vmem:[#allocation5 + $0x170] sm:$0xf0]  ;;  %v2866_v43 = vor.u32 %v3878_v28, %v2865_v27  ;;  %v3513_v27 = vld [vmem:[#allocation5 + $0x698] sm:$0xf]  ;;  %v4040_v28 = vld [vmem:[#allocation5 + $0x6ac] sm:$0xf0]  ;;  %p4300_p8 = pneg %p4299_p4 }
  0x8f   : > { %2163 = vmatpush.bf16.msra.mxu3 %v3654_v52  ;;  %v3346_v52 = vor.u32 %v3998_v45, %v3345_v44  ;;  %v3058_v44 = vor.u32 %v3926_v31, %v3057_v29  ;;  %v3917_v45 = vld [vmem:[#allocation5 + $0x2dc] sm:$0xf]  ;;  %v2846_v50 = vor.u32 %v3869_v41, %v2843_v42  ;;  %v3705_v29 = vld [vmem:[#allocation5 + $0x818] sm:$0xf]  ;;  %v4088_v31 = vld [vmem:[#allocation5 + $0x82c] sm:$0xf0] }
  0x90   : > { %2122 = vmatpush.bf16.msra.mxu0 %v3054_v60  ;;  %v2938_v60 = vor.u32 %v3896_v53, %v2937_v51  ;;  %v3585_v51 = vld [vmem:[#allocation5 + $0x728] sm:$0xf]  ;;  %v4034_v42 = vld [vmem:[#allocation5 + $0x67c] sm:$0xf0]  ;;  %p4305_p10 = pnand %p4304_p2, %p4300_p8 }
  0x91   : > { %2136 = vmatpush.bf16.msra.mxu1 %v3246_v0  ;;  %v2913_v0 = vld [vmem:[#allocation5 + $0x1e8] sm:$0xf] }
  0x92   : > { %2150 = vmatpush.bf16.msra.mxu2 %v3438_v1  ;;  %v3322_v1 = vor.u32 %v3992_v58, %v3321_v56  ;;  %v2914_v9 = vor.u32 %v3890_v2, %v2913_v0  ;;  %v3777_v53 = vld [vmem:[#allocation5 + $0x8a8] sm:$0xf]  ;;  %v3863_v56 = vld [vmem:[#allocation5 + $0x12c] sm:$0xf]  ;;  %v2819_v58 = vld [vmem:[#allocation5 + $0x140] sm:$0xf0] }
  0x93   : > { %2164 = vmatpush.bf16.msra.mxu3 %v3630_v4  ;;  %2123 = vmatmul.bf16.vlgmr.msra.gmra.mxu0 %v4509_v22  ;;  %v3938_v4 = vld [vmem:[#allocation5 + $0x37c] sm:$0xf0]  ;;  %v3561_v0 = vld [vmem:[#allocation5 + $0x6f8] sm:$0xf]  ;;  %v3489_v41 = vld [vmem:[#allocation5 + $0x668] sm:$0xf] }
  0x94   : > { %2171 = vmatpush.bf16.msrb.mxu0 %v2842_v5  ;;  %2137 = vmatmul.bf16.vlgmr.msra.gmra.mxu1 %v4511_v23  ;;  %v3297_v5 = vld [vmem:[#allocation5 + $0x4e8] sm:$0xf]  ;;  %v3106_v10 = vor.u32 %v3938_v4, %v3105_v3  ;;  %v3753_v2 = vld [vmem:[#allocation5 + $0x878] sm:$0xf]  ;;  %v4100_v4 = vld [vmem:[#allocation5 + $0x88c] sm:$0xf0] }
  0x95   : > { %2185 = vmatpush.bf16.msrb.mxu1 %v3034_v7  ;;  %2151 = vmatmul.bf16.vlgmr.msra.gmra.mxu2 %v4519_v35  ;;  %v3986_v7 = vld [vmem:[#allocation5 + $0x4fc] sm:$0xf0] }
  0x96   : > { %2199 = vmatpush.bf16.msrb.mxu2 %v3226_v8  ;;  %2165 = vmatmul.bf16.vlgmr.msra.gmra.mxu3 %v4521_v39  ;;  %v2722_v8 = vor.u32 %v3842_v63, %v2721_v62  ;;  %v3298_v14 = vor.u32 %v3986_v7, %v3297_v5  ;;  %v3778_v62 = vor.u32 %v4106_v55, %v3777_v53  ;;  %v3857_v5 = vld [vmem:[#allocation5 + $0xfc] sm:$0xf]  ;;  %v2795_v7 = vld [vmem:[#allocation5 + $0x110] sm:$0xf0]  ;;  %v3465_v53 = vld [vmem:[#allocation5 + $0x638] sm:$0xf] }
  0x97   : > { %2213 = vmatpush.bf16.msrb.mxu3 %v3418_v12  ;;  %v3836_v12 = vld [vmem:[#allocation5 + $0x4c] sm:$0xf0]  ;;  %v2822_v63 = vor.u32 %v3863_v56, %v2819_v58  ;;  %v3657_v55 = vld [vmem:[#allocation5 + $0x7b8] sm:$0xf] }
  0x98   : > { %2172 = vmatpush.bf16.msrb.mxu0 %v2818_v18  ;;  %v3273_v18 = vld [vmem:[#allocation5 + $0x4b8] sm:$0xf]  ;;  %v4076_v58 = vld [vmem:[#allocation5 + $0x7cc] sm:$0xf0] }
  0x99   : > { %2186 = vmatpush.bf16.msrb.mxu1 %v3010_v19  ;;  %v3980_v19 = vld [vmem:[#allocation5 + $0x4cc] sm:$0xf0] }
  0x9a   : > { %2200 = vmatpush.bf16.msrb.mxu2 %v3202_v20  ;;  %v2698_v20 = vor.u32 %v3836_v12, %v2697_v11  ;;  %v3274_v30 = vor.u32 %v3980_v19, %v3273_v18  ;;  %v3754_v11 = vor.u32 %v4100_v4, %v3753_v2  ;;  %v2798_v12 = vor.u32 %v3857_v5, %v2795_v7  ;;  %v3851_v18 = vld [vmem:[#allocation5 + $0xcc] sm:$0xf]  ;;  %v2771_v19 = vld [vmem:[#allocation5 + $0xe0] sm:$0xf0]  ;;  %v3633_v4 = vld [vmem:[#allocation5 + $0x788] sm:$0xf] }
  0x9b   : > { %2214 = vmatpush.bf16.msrb.mxu3 %v3394_v26  ;;  %v3082_v26 = vor.u32 %v3932_v17, %v3081_v16  ;;  %v4094_v17 = vld [vmem:[#allocation5 + $0x85c] sm:$0xf0]  ;;  %v3658_v2 = vor.u32 %v4076_v58, %v3657_v55  ;;  %v3827_v7 = vld [vmem:[#allocation5 + $0xc] sm:$0xf] }
  0x9c   : > { %2173 = vmatpush.bf16.msrb.mxu0 %v2794_v32  ;;  %v3249_v32 = vld [vmem:[#allocation5 + $0x488] sm:$0xf]  ;;  %v4070_v5 = vld [vmem:[#allocation5 + $0x79c] sm:$0xf0]  ;;  %v3947_v55 = vld [vmem:[#allocation5 + $0x3cc] sm:$0xf] }
  0x9d   : > { %2187 = vmatpush.bf16.msrb.mxu1 %v2986_v33  ;;  %v3974_v33 = vld [vmem:[#allocation5 + $0x49c] sm:$0xf0]  ;;  %v3995_v58 = vld [vmem:[#allocation5 + $0x54c] sm:$0xf] }
  0x9e   : > { %2201 = vmatpush.bf16.msrb.mxu2 %v3178_v34  ;;  %v3609_v34 = vld [vmem:[#allocation5 + $0x758] sm:$0xf] }
  0x9f   : > { %2215 = vmatpush.bf16.msrb.mxu3 %v3370_v40  ;;  %v4112_v40 = vld [vmem:[#allocation5 + $0x8ec] sm:$0xf0] }
  0xa0   : > { %2174 = vmatpush.bf16.msrb.mxu0 %v2770_v46  ;;  %v3035_v46 = vld [vmem:[#allocation5 + $0x2f0] sm:$0xf0]  ;;  %v3802_v49 = vor.u32 %v4112_v40, %v3801_v37  ;;  %v3514_v37 = vor.u32 %v4040_v28, %v3513_v27 }
  0xa1   : > { %2188 = vmatpush.bf16.msrb.mxu1 %v2962_v47  ;;  %v3250_v47 = vor.u32 %v3974_v33, %v3249_v32  ;;  %v3038_v54 = vor.u32 %v3917_v45, %v3035_v46  ;;  %v3845_v32 = vld [vmem:[#allocation5 + $0x9c] sm:$0xf]  ;;  %v2747_v33 = vld [vmem:[#allocation5 + $0xb0] sm:$0xf0]  ;;  %v4082_v45 = vld [vmem:[#allocation5 + $0x7fc] sm:$0xf0] }
  0xa2   : > { %2202 = vmatpush.bf16.msrb.mxu2 %v3154_v48  ;;  %v3610_v48 = vor.u32 %v4064_v36, %v3609_v34  ;;  %v3893_v34 = vld [vmem:[#allocation5 + $0x21c] sm:$0xf]  ;;  %v2939_v36 = vld [vmem:[#allocation5 + $0x230] sm:$0xf0]  ;;  %v2750_v40 = vor.u32 %v3845_v32, %v2747_v33  ;;  %v3839_v46 = vld [vmem:[#allocation5 + $0x6c] sm:$0xf] }
  0xa3   : > { %2216 = vmatpush.bf16.msrb.mxu3 %v3346_v52  ;;  %v4058_v52 = vld [vmem:[#allocation5 + $0x73c] sm:$0xf0]  ;;  %v3395_v33 = vld [vmem:[#allocation5 + $0x5c0] sm:$0xf0] }
  0xa4   : > { %2175 = vmatpush.bf16.msrb.mxu0 %v2746_v59  ;;  %v3911_v59 = vld [vmem:[#allocation5 + $0x2ac] sm:$0xf] }
  0xa5   : > { %2189 = vmatpush.bf16.msrb.mxu1 %v2938_v60  ;;  %v3011_v60 = vld [vmem:[#allocation5 + $0x2c0] sm:$0xf0] }
  0xa6   : > { %2203 = vmatpush.bf16.msrb.mxu2 %v3130_v61  ;;  %v3586_v61 = vor.u32 %v4058_v52, %v3585_v51  ;;  %v3014_v3 = vor.u32 %v3911_v59, %v3011_v60  ;;  %v3833_v59 = vld [vmem:[#allocation5 + $0x3c] sm:$0xf]  ;;  %v2699_v60 = vld [vmem:[#allocation5 + $0x50] sm:$0xf0] }
  0xa7   : > { %2217 = vmatpush.bf16.msrb.mxu3 %v3322_v1  ;;  %v4052_v1 = vld [vmem:[#allocation5 + $0x70c] sm:$0xf0] }
  0xa8   : > { %2176 = vmatpush.bf16.msrb.mxu0 %v2722_v8  ;;  %v3905_v8 = vld [vmem:[#allocation5 + $0x27c] sm:$0xf] }
  0xa9   : > { %2190 = vmatpush.bf16.msrb.mxu1 %v2914_v9  ;;  %v2987_v9 = vld [vmem:[#allocation5 + $0x290] sm:$0xf0] }
  0xaa   : > { %2204 = vmatpush.bf16.msrb.mxu2 %v3106_v10  ;;  %v3562_v10 = vor.u32 %v4052_v1, %v3561_v0  ;;  %v2990_v16 = vor.u32 %v3905_v8, %v2987_v9  ;;  %v3441_v0 = vld [vmem:[#allocation5 + $0x608] sm:$0xf]  ;;  %v4022_v1 = vld [vmem:[#allocation5 + $0x61c] sm:$0xf0]  ;;  %v2675_v9 = vld [vmem:[#allocation5 + $0x20] sm:$0xf0] }
  0xab   : > { %2218 = vmatpush.bf16.msrb.mxu3 %v3298_v14  ;;  %v4046_v14 = vld [vmem:[#allocation5 + $0x6dc] sm:$0xf0] }
  0xac   : > { %2177 = vmatpush.bf16.msrb.mxu0 %v2698_v20  ;;  %v3899_v20 = vld [vmem:[#allocation5 + $0x24c] sm:$0xf]  ;;  %v3538_v24 = vor.u32 %v4046_v14, %v3537_v13  ;;  %v3227_v13 = vld [vmem:[#allocation5 + $0x470] sm:$0xf0]  ;;  %v4013_v14 = vld [vmem:[#allocation5 + $0x5dc] sm:$0xf] }
  0xad   : > { %2191 = vmatpush.bf16.msrb.mxu1 %v2890_v25  ;;  %v3730_v25 = vor.u32 %v4094_v17, %v3729_v15  ;;  %v3442_v15 = vor.u32 %v4022_v1, %v3441_v0  ;;  %v4061_v17 = vld [vmem:[#allocation5 + $0x75c] sm:$0xf]  ;;  %v3731_v0 = vld [vmem:[#allocation5 + $0x860] sm:$0xf0] }
  0xae   : > { %2205 = vmatpush.bf16.msrb.mxu2 %v3082_v26  ;;  %v2774_v26 = vor.u32 %v3851_v18, %v2771_v19  ;;  %v3611_v18 = vld [vmem:[#allocation5 + $0x770] sm:$0xf0]  ;;  %v3634_v19 = vor.u32 %v4070_v5, %v3633_v4  ;;  %v3941_v4 = vld [vmem:[#allocation5 + $0x39c] sm:$0xf] }
  0xaf   : > { %2219 = vmatpush.bf16.msrb.mxu3 %v3274_v30  ;;  %v2966_v30 = vor.u32 %v3899_v20, %v2963_v21  ;;  %v2678_v20 = vor.u32 %v3827_v7, %v2675_v9  ;;  %v4109_v21 = vld [vmem:[#allocation5 + $0x8dc] sm:$0xf]  ;;  %v3614_v28 = vor.u32 %v4061_v17, %v3611_v18  ;;  %v3131_v5 = vld [vmem:[#allocation5 + $0x3b0] sm:$0xf0]  ;;  %v3107_v18 = vld [vmem:[#allocation5 + $0x380] sm:$0xf0] }
  0xb0   : > { %2178 = vmatpush.bf16.msrb.mxu0 %v2674_v38  ;;  %v3706_v38 = vor.u32 %v4088_v31, %v3705_v29  ;;  %v3959_v29 = vld [vmem:[#allocation5 + $0x42c] sm:$0xf]  ;;  %v3989_v7 = vld [vmem:[#allocation5 + $0x51c] sm:$0xf]  ;;  %v3323_v9 = vld [vmem:[#allocation5 + $0x530] sm:$0xf0] }
  0xb1   : > { %2192 = vmatpush.bf16.msrb.mxu1 %v2866_v43  ;;  %v3681_v43 = vld [vmem:[#allocation5 + $0x7e8] sm:$0xf]  ;;  %v4007_v31 = vld [vmem:[#allocation5 + $0x5ac] sm:$0xf] }
  0xb2   : > { %2206 = vmatpush.bf16.msrb.mxu2 %v3058_v44  ;;  %v2942_v44 = vor.u32 %v3893_v34, %v2939_v36  ;;  %v3682_v51 = vor.u32 %v4082_v45, %v3681_v43  ;;  %v4055_v34 = vld [vmem:[#allocation5 + $0x72c] sm:$0xf]  ;;  %v3587_v36 = vld [vmem:[#allocation5 + $0x740] sm:$0xf0]  ;;  %v3953_v43 = vld [vmem:[#allocation5 + $0x3fc] sm:$0xf] }
  0xb3   : > { %2220 = vmatpush.bf16.msrb.mxu3 %v3250_v47  ;;  %2179 = vmatmul.bf16.vlgmr.msrb.gmra.mxu0 %v4497_v57  ;;  %v2723_v47 = vld [vmem:[#allocation5 + $0x80] sm:$0xf0]  ;;  %v4001_v45 = vld [vmem:[#allocation5 + $0x57c] sm:$0xf] }
  0xb4   : > { %2227 = vmatpush.bf16.msra.mxu0 %v3610_v48  ;;  %2193 = vmatmul.bf16.vlgmr.msrb.gmra.mxu1 %v4502_v6  ;;  %v3887_v48 = vld [vmem:[#allocation5 + $0x1ec] sm:$0xf]  ;;  %v2726_v52 = vor.u32 %v3839_v46, %v2723_v47  ;;  %v3371_v47 = vld [vmem:[#allocation5 + $0x590] sm:$0xf0] }
  0xb5   : > { %2241 = vmatpush.bf16.msra.mxu1 %v3802_v49  ;;  %2207 = vmatmul.bf16.vlgmr.msrb.gmra.mxu2 %v4509_v22  ;;  %v2915_v49 = vld [vmem:[#allocation5 + $0x200] sm:$0xf0] }
  0xb6   : > { %2255 = vmatpush.bf16.msra.mxu2 %v2846_v50  ;;  %2221 = vmatmul.bf16.vlgmr.msrb.gmra.mxu3 %v4511_v23  ;;  %v3490_v50 = vor.u32 %v4034_v42, %v3489_v41  ;;  %v2918_v56 = vor.u32 %v3887_v48, %v2915_v49  ;;  %v3398_v41 = vor.u32 %v4007_v31, %v3395_v33  ;;  %v4049_v48 = vld [vmem:[#allocation5 + $0x6fc] sm:$0xf]  ;;  %v3563_v49 = vld [vmem:[#allocation5 + $0x710] sm:$0xf0] }
  0xb7   : > { %2269 = vmatpush.bf16.msra.mxu3 %v3038_v54  ;;  %v4028_v54 = vld [vmem:[#allocation5 + $0x64c] sm:$0xf0]  ;;  %v3590_v42 = vor.u32 %v4055_v34, %v3587_v36  ;;  %v3083_v36 = vld [vmem:[#allocation5 + $0x350] sm:$0xf0] }
  0xb8   : > { %2228 = vmatpush.bf16.msra.mxu0 %v3586_v61  ;;  %v3881_v61 = vld [vmem:[#allocation5 + $0x1bc] sm:$0xf] }
  0xb9   : > { %2242 = vmatpush.bf16.msra.mxu1 %v3778_v62  ;;  %v2891_v62 = vld [vmem:[#allocation5 + $0x1d0] sm:$0xf0] }
  0xba   : > { %2256 = vmatpush.bf16.msra.mxu2 %v2822_v63  ;;  %v3466_v63 = vor.u32 %v4028_v54, %v3465_v53  ;;  %v2894_v8 = vor.u32 %v3881_v61, %v2891_v62  ;;  %v3374_v53 = vor.u32 %v4001_v45, %v3371_v47  ;;  %v3566_v54 = vor.u32 %v4049_v48, %v3563_v49  ;;  %v4043_v61 = vld [vmem:[#allocation5 + $0x6cc] sm:$0xf]  ;;  %v3539_v62 = vld [vmem:[#allocation5 + $0x6e0] sm:$0xf0]  ;;  %v3659_v45 = vld [vmem:[#allocation5 + $0x7d0] sm:$0xf0] }
  0xbb   : > { %2270 = vmatpush.bf16.msra.mxu3 %v3014_v3  ;;  %v2702_v3 = vor.u32 %v3833_v59, %v2699_v60  ;;  %v3347_v60 = vld [vmem:[#allocation5 + $0x560] sm:$0xf0]  ;;  %v3923_v47 = vld [vmem:[#allocation5 + $0x30c] sm:$0xf] }
  0xbc   : > { %2229 = vmatpush.bf16.msra.mxu0 %v3562_v10  ;;  %v3875_v10 = vld [vmem:[#allocation5 + $0x18c] sm:$0xf]  ;;  %v3059_v48 = vld [vmem:[#allocation5 + $0x320] sm:$0xf0] }
  0xbd   : > { %2243 = vmatpush.bf16.msra.mxu1 %v3754_v11  ;;  %v2867_v11 = vld [vmem:[#allocation5 + $0x1a0] sm:$0xf0] }
  0xbe   : > { %2257 = vmatpush.bf16.msra.mxu2 %v2798_v12  ;;  %v3965_v12 = vld [vmem:[#allocation5 + $0x45c] sm:$0xf] }
  0xbf   : > { %2271 = vmatpush.bf16.msra.mxu3 %v2990_v16  ;;  %v3419_v16 = vld [vmem:[#allocation5 + $0x5f0] sm:$0xf0] }
  0xc0   : > { %2230 = vmatpush.bf16.msra.mxu0 %v3538_v24  ;;  %v3803_v24 = vld [vmem:[#allocation5 + $0x8f0] sm:$0xf0]  ;;  %v3422_v27 = vor.u32 %v4013_v14, %v3419_v16  ;;  %v3134_v14 = vor.u32 %v3941_v4, %v3131_v5  ;;  %v3326_v16 = vor.u32 %v3989_v7, %v3323_v9  ;;  %v3425_v5 = vld [vmem:[#allocation5 + $0x5e0] sm:$0xf]  ;;  %v4017_v7 = vld [vmem:[#allocation5 + $0x5f4] sm:$0xf0] }
  0xc1   : > { %2244 = vmatpush.bf16.msra.mxu1 %v3730_v25  ;;  %v2870_v25 = vor.u32 %v3875_v10, %v2867_v11  ;;  %v3806_v32 = vor.u32 %v4109_v21, %v3803_v24  ;;  %v4037_v10 = vld [vmem:[#allocation5 + $0x69c] sm:$0xf]  ;;  %v3515_v11 = vld [vmem:[#allocation5 + $0x6b0] sm:$0xf0]  ;;  %v4031_v24 = vld [vmem:[#allocation5 + $0x66c] sm:$0xf] }
  0xc2   : > { %2258 = vmatpush.bf16.msra.mxu2 %v2774_v26  ;;  %v3230_v26 = vor.u32 %v3965_v12, %v3227_v13  ;;  %v4085_v12 = vld [vmem:[#allocation5 + $0x81c] sm:$0xf]  ;;  %v3707_v13 = vld [vmem:[#allocation5 + $0x830] sm:$0xf0]  ;;  %v3518_v17 = vor.u32 %v4037_v10, %v3515_v11 }
  0xc3   : > { %2272 = vmatpush.bf16.msra.mxu3 %v2966_v30  ;;  %v3203_v30 = vld [vmem:[#allocation5 + $0x440] sm:$0xf0]  ;;  %v3710_v21 = vor.u32 %v4085_v12, %v3707_v13 }
  0xc4   : > { %2231 = vmatpush.bf16.msra.mxu0 %v3514_v37  ;;  %v4103_v37 = vld [vmem:[#allocation5 + $0x8ac] sm:$0xf] }
  0xc5   : > { %2245 = vmatpush.bf16.msra.mxu1 %v3706_v38  ;;  %v3779_v38 = vld [vmem:[#allocation5 + $0x8c0] sm:$0xf0] }
  0xc6   : > { %2259 = vmatpush.bf16.msra.mxu2 %v2750_v40  ;;  %v3206_v40 = vor.u32 %v3959_v29, %v3203_v30  ;;  %v3782_v46 = vor.u32 %v4103_v37, %v3779_v38  ;;  %v3929_v30 = vld [vmem:[#allocation5 + $0x33c] sm:$0xf] }
  0xc7   : > { %2273 = vmatpush.bf16.msra.mxu3 %v2942_v44  ;;  %v3179_v44 = vld [vmem:[#allocation5 + $0x410] sm:$0xf0]  ;;  %v3977_v37 = vld [vmem:[#allocation5 + $0x4bc] sm:$0xf] }
  0xc8   : > { %2232 = vmatpush.bf16.msra.mxu0 %v3490_v50  ;;  %v4097_v50 = vld [vmem:[#allocation5 + $0x87c] sm:$0xf] }
  0xc9   : > { %2246 = vmatpush.bf16.msra.mxu1 %v3682_v51  ;;  %v3755_v51 = vld [vmem:[#allocation5 + $0x890] sm:$0xf0] }
  0xca   : > { %2260 = vmatpush.bf16.msra.mxu2 %v2726_v52  ;;  %v3182_v52 = vor.u32 %v3953_v43, %v3179_v44  ;;  %v3758_v59 = vor.u32 %v4097_v50, %v3755_v51  ;;  %v4073_v44 = vld [vmem:[#allocation5 + $0x7bc] sm:$0xf]  ;;  %v3971_v51 = vld [vmem:[#allocation5 + $0x48c] sm:$0xf] }
  0xcb   : > { %2274 = vmatpush.bf16.msra.mxu3 %v2918_v56  ;;  %v3155_v56 = vld [vmem:[#allocation5 + $0x3e0] sm:$0xf0] }
  0xcc   : > { %2233 = vmatpush.bf16.msra.mxu0 %v3466_v63  ;;  %v4091_v63 = vld [vmem:[#allocation5 + $0x84c] sm:$0xf]  ;;  %v3158_v1 = vor.u32 %v3947_v55, %v3155_v56  ;;  %v3662_v55 = vor.u32 %v4073_v44, %v3659_v45  ;;  %v3443_v56 = vld [vmem:[#allocation5 + $0x620] sm:$0xf0]  ;;  %v4005_v44 = vld [vmem:[#allocation5 + $0x594] sm:$0xf0] }
  0xcd   : > { %2247 = vmatpush.bf16.msra.mxu1 %v3658_v2  ;;  %v3350_v2 = vor.u32 %v3995_v58, %v3347_v60  ;;  %v4067_v58 = vld [vmem:[#allocation5 + $0x78c] sm:$0xf]  ;;  %v2849_v60 = vld [vmem:[#allocation5 + $0x160] sm:$0xf] }
  0xce   : > { %2261 = vmatpush.bf16.msra.mxu2 %v2702_v3  ;;  %v3542_v3 = vor.u32 %v4043_v61, %v3539_v62  ;;  %v3873_v61 = vld [vmem:[#allocation5 + $0x174] sm:$0xf0]  ;;  %v3041_v62 = vld [vmem:[#allocation5 + $0x2e0] sm:$0xf] }
  0xcf   : > { %2275 = vmatpush.bf16.msra.mxu3 %v2894_v8  ;;  %v3734_v8 = vor.u32 %v4091_v63, %v3731_v0  ;;  %v3062_v63 = vor.u32 %v3923_v47, %v3059_v48  ;;  %v3921_v0 = vld [vmem:[#allocation5 + $0x2f4] sm:$0xf0]  ;;  %v2850_v11 = vor.u32 %v3873_v61, %v2849_v60  ;;  %v3353_v60 = vld [vmem:[#allocation5 + $0x550] sm:$0xf]  ;;  %v3999_v61 = vld [vmem:[#allocation5 + $0x564] sm:$0xf0] }
  0xd0   : > { %2234 = vmatpush.bf16.msra.mxu0 %v3442_v15  ;;  %v3935_v15 = vld [vmem:[#allocation5 + $0x36c] sm:$0xf]  ;;  %v2012_v34 = vpop.f32.mrf.mxu0  ;;  %v3042_v12 = vor.u32 %v3921_v0, %v3041_v62 }
  0xd1   : > { %2248 = vmatpush.bf16.msra.mxu1 %v3634_v19  ;;  %v3983_v19 = vld [vmem:[#allocation5 + $0x4ec] sm:$0xf]  ;;  %v3110_v29 = vor.u32 %v3935_v15, %v3107_v18  ;;  %v2026_v43 = vpop.f32.mrf.mxu1  ;;  %v2825_v15 = vld [vmem:[#allocation5 + $0x130] sm:$0xf]  ;;  %v3426_v18 = vor.u32 %v4017_v7, %v3425_v5  ;;  %v3849_v5 = vld [vmem:[#allocation5 + $0xb4] sm:$0xf0] }
  0xd2   : > { %2262 = vmatpush.bf16.msra.mxu2 %v2678_v20  ;;  %v3299_v20 = vld [vmem:[#allocation5 + $0x500] sm:$0xf0]  ;;  %v2945_v7 = vld [vmem:[#allocation5 + $0x220] sm:$0xf] }
  0xd3   : > { %2276 = vmatpush.bf16.msra.mxu3 %v2870_v25  ;;  %2235 = vmatmul.bf16.vlgmr.msra.gmra.mxu0 %v4519_v35  ;;  %v3491_v25 = vld [vmem:[#allocation5 + $0x680] sm:$0xf0]  ;;  %v3302_v31 = vor.u32 %v3983_v19, %v3299_v20  ;;  %v3915_v19 = vld [vmem:[#allocation5 + $0x2c4] sm:$0xf0]  ;;  %v3209_v20 = vld [vmem:[#allocation5 + $0x430] sm:$0xf] }
  0xd4   : > { %2283 = vmatpush.bf16.msrb.mxu0 %v3230_v26  ;;  %2249 = vmatmul.bf16.vlgmr.msra.gmra.mxu1 %v4521_v39  ;;  %v4539_v26 = vld [vmem:[#allocation7] sm:$0x3f] }
  0xd5   : > { %2297 = vmatpush.bf16.msrb.mxu1 %v3422_v27  ;;  %2263 = vmatmul.bf16.vlgmr.msra.gmra.mxu2 %v4497_v57  ;;  %v4079_v27 = vld [vmem:[#allocation5 + $0x7ec] sm:$0xf]  ;;  %v521_v33 = vperm.slane %v4539_v26, 0 }
  0xd6   : > { %2311 = vmatpush.bf16.msrb.mxu2 %v3614_v28  ;;  %2277 = vmatmul.bf16.vlgmr.msra.gmra.mxu3 %v4502_v6  ;;  %v3683_v28 = vld [vmem:[#allocation5 + $0x800] sm:$0xf0] }
  0xd7   : > { %2325 = vmatpush.bf16.msrb.mxu3 %v3806_v32  ;;  %v3494_v32 = vor.u32 %v4031_v24, %v3491_v25  ;;  %v3686_v38 = vor.u32 %v4079_v27, %v3683_v28  ;;  %v3401_v25 = vld [vmem:[#allocation5 + $0x5b0] sm:$0xf]  ;;  %v4011_v27 = vld [vmem:[#allocation5 + $0x5c4] sm:$0xf0] }
  0xd8   : > { %2284 = vmatpush.bf16.msrb.mxu0 %v3206_v40  ;;  %v3275_v40 = vld [vmem:[#allocation5 + $0x4d0] sm:$0xf0] }
  0xd9   : > { %2298 = vmatpush.bf16.msrb.mxu1 %v3398_v41  ;;  %v4025_v41 = vld [vmem:[#allocation5 + $0x63c] sm:$0xf]  ;;  %v3278_v49 = vor.u32 %v3977_v37, %v3275_v40  ;;  %v2028_v24 = vpop.f32.mrf.mxu1  ;;  %v2054_v28 = vpop.f32.mrf.mxu3  ;;  %v3861_v37 = vld [vmem:[#allocation5 + $0x114] sm:$0xf0]  ;;  %v3402_v40 = vor.u32 %v4011_v27, %v3401_v25  ;;  %v3891_v27 = vld [vmem:[#allocation5 + $0x204] sm:$0xf0] }
  0xda   : > { %2312 = vmatpush.bf16.msrb.mxu2 %v3590_v42  ;;  %v3467_v42 = vld [vmem:[#allocation5 + $0x650] sm:$0xf0] }
  0xdb   : > { %2326 = vmatpush.bf16.msrb.mxu3 %v3782_v46  ;;  %v3086_v46 = vor.u32 %v3929_v30, %v3083_v36  ;;  %v3470_v50 = vor.u32 %v4025_v41, %v3467_v42  ;;  %v2801_v36 = vld [vmem:[#allocation5 + $0x100] sm:$0xf]  ;;  %v3909_v41 = vld [vmem:[#allocation5 + $0x294] sm:$0xf0] }
  0xdc   : > { %2285 = vmatpush.bf16.msrb.mxu0 %v3182_v52  ;;  %v3251_v52 = vld [vmem:[#allocation5 + $0x4a0] sm:$0xf0]  ;;  %v3185_v42 = vld [vmem:[#allocation5 + $0x400] sm:$0xf] }
  0xdd   : > { %2299 = vmatpush.bf16.msrb.mxu1 %v3374_v53  ;;  %v4019_v53 = vld [vmem:[#allocation5 + $0x60c] sm:$0xf] }
  0xde   : > { %2313 = vmatpush.bf16.msrb.mxu2 %v3566_v54  ;;  %v2013_v54 = vadd.f32 %v2012_v34, %v521_v33  ;;  %v3446_v4 = vor.u32 %v4019_v53, %v3443_v56  ;;  %v3161_v56 = vld [vmem:[#allocation5 + $0x3d0] sm:$0xf] }
  0xdf   : > { %2327 = vmatpush.bf16.msrb.mxu3 %v3758_v59  ;;  %v3635_v59 = vld [vmem:[#allocation5 + $0x7a0] sm:$0xf0] }
  0xe0   : > { %2286 = vmatpush.bf16.msrb.mxu0 %v3158_v1  ;;  %v3233_v1 = vld [vmem:[#allocation5 + $0x460] sm:$0xf]  ;;  %v2027_v9 = vadd.f32 %v2026_v43, %v2013_v54  ;;  %v3638_v10 = vor.u32 %v4067_v58, %v3635_v59  ;;  %v3957_v43 = vld [vmem:[#allocation5 + $0x414] sm:$0xf0]  ;;  %v3951_v58 = vld [vmem:[#allocation5 + $0x3e4] sm:$0xf0] }
  0xe1   : > { %2300 = vmatpush.bf16.msrb.mxu1 %v3350_v2  ;;  %v3969_v2 = vld [vmem:[#allocation5 + $0x474] sm:$0xf0] }
  0xe2   : > { %2314 = vmatpush.bf16.msrb.mxu2 %v3542_v3  ;;  %v3254_v3 = vor.u32 %v3971_v51, %v3251_v52  ;;  %v3234_v13 = vor.u32 %v3969_v2, %v3233_v1  ;;  %v3855_v51 = vld [vmem:[#allocation5 + $0xe4] sm:$0xf0]  ;;  %v2969_v52 = vld [vmem:[#allocation5 + $0x250] sm:$0xf] }
  0xe3   : > { %2328 = vmatpush.bf16.msrb.mxu3 %v3734_v8  ;;  %v2040_v8 = vpop.f32.mrf.mxu2 }
  0xe4   : > { %2287 = vmatpush.bf16.msrb.mxu0 %v3134_v14  ;;  %v2014_v14 = vpop.f32.mrf.mxu0 }
  0xe5   : > { %2301 = vmatpush.bf16.msrb.mxu1 %v3326_v16  ;;  %v3867_v16 = vld [vmem:[#allocation5 + $0x144] sm:$0xf0] }
  0xe6   : > { %2315 = vmatpush.bf16.msrb.mxu2 %v3518_v17  ;;  %v3017_v17 = vld [vmem:[#allocation5 + $0x2b0] sm:$0xf]  ;;  %v2826_v30 = vor.u32 %v3867_v16, %v2825_v15  ;;  %v3993_v15 = vld [vmem:[#allocation5 + $0x534] sm:$0xf0] }
  0xe7   : > { %2329 = vmatpush.bf16.msrb.mxu3 %v3710_v21  ;;  %v3963_v21 = vld [vmem:[#allocation5 + $0x444] sm:$0xf0] }
  0xe8   : > { %2288 = vmatpush.bf16.msrb.mxu0 %v3110_v29  ;;  %v2015_v29 = vadd.f32 %v2014_v14, %v521_v33  ;;  %v3210_v34 = vor.u32 %v3963_v21, %v3209_v20  ;;  %v3377_v33 = vld [vmem:[#allocation5 + $0x580] sm:$0xf]  ;;  %v2729_v20 = vld [vmem:[#allocation5 + $0x70] sm:$0xf]  ;;  %v3843_v21 = vld [vmem:[#allocation5 + $0x84] sm:$0xf0] }
  0xe9   : > { %2302 = vmatpush.bf16.msrb.mxu1 %v3302_v31  ;;  %v2041_v31 = vadd.f32 %v2040_v8, %v2027_v9  ;;  %v3378_v54 = vor.u32 %v4005_v44, %v3377_v33  ;;  %v2056_v8 = vpop.f32.mrf.mxu3  ;;  %v3354_v9 = vor.u32 %v3999_v61, %v3353_v60  ;;  %v3329_v14 = vld [vmem:[#allocation5 + $0x520] sm:$0xf]  ;;  %v3927_v60 = vld [vmem:[#allocation5 + $0x324] sm:$0xf0]  ;;  %v3257_v61 = vld [vmem:[#allocation5 + $0x490] sm:$0xf] }
  0xea   : > { %2316 = vmatpush.bf16.msrb.mxu2 %v3494_v32  ;;  %v3018_v32 = vor.u32 %v3915_v19, %v3017_v17  ;;  %v2029_v45 = vadd.f32 %v2028_v24, %v2015_v29  ;;  %v2921_v24 = vld [vmem:[#allocation5 + $0x1f0] sm:$0xf]  ;;  %v3330_v25 = vor.u32 %v3993_v15, %v3329_v14  ;;  %v3939_v29 = vld [vmem:[#allocation5 + $0x384] sm:$0xf0]  ;;  %v522_v15 = vperm.slane %v4539_v26, 1 }
  0xeb   : > { %2330 = vmatpush.bf16.msrb.mxu3 %v3686_v38  ;;  %v2993_v38 = vld [vmem:[#allocation5 + $0x280] sm:$0xf]  ;;  %v2055_v47 = vadd.f32 %v2054_v28, %v2041_v31  ;;  %v2042_v53 = vpop.f32.mrf.mxu2  ;;  %v3113_v28 = vld [vmem:[#allocation5 + $0x370] sm:$0xf] }
  0xec   : > { %2289 = vmatpush.bf16.msrb.mxu0 %v3086_v46  ;;  %v2802_v46 = vor.u32 %v3861_v37, %v2801_v36  ;;  %v2994_v48 = vor.u32 %v3909_v41, %v2993_v38  ;;  %v2043_v1 = vadd.f32 %v2042_v53, %v2029_v45  ;;  %v3305_v31 = vld [vmem:[#allocation5 + $0x4f0] sm:$0xf]  ;;  %v2730_v36 = vor.u32 %v3843_v21, %v2729_v20  ;;  %v2705_v41 = vld [vmem:[#allocation5 + $0x40] sm:$0xf]  ;;  %v3885_v45 = vld [vmem:[#allocation5 + $0x1d4] sm:$0xf0] }
  0xed   : > { %2303 = vmatpush.bf16.msrb.mxu1 %v3278_v49  ;;  %v3186_v49 = vor.u32 %v3957_v43, %v3185_v42  ;;  %v2922_v38 = vor.u32 %v3891_v27, %v2921_v24  ;;  %v3837_v42 = vld [vmem:[#allocation5 + $0x54] sm:$0xf0]  ;;  %v2897_v43 = vld [vmem:[#allocation5 + $0x1c0] sm:$0xf]  ;;  %v3785_v20 = vld [vmem:[#allocation5 + $0x8b0] sm:$0xf] }
  0xee   : > { %2317 = vmatpush.bf16.msrb.mxu2 %v3470_v50  ;;  %v2777_v50 = vld [vmem:[#allocation5 + $0xd0] sm:$0xf]  ;;  %v2057_v17 = vadd.f32 %v2056_v8, %v2043_v1  ;;  %v2898_v53 = vor.u32 %v3885_v45, %v2897_v43  ;;  %v3809_v1 = vld [vmem:[#allocation5 + $0x8e0] sm:$0xf]  ;;  %v4107_v24 = vld [vmem:[#allocation5 + $0x8c4] sm:$0xf0] }
  0xef   : > { %2331 = vmatpush.bf16.msrb.mxu3 %v3662_v55  ;;  %v3903_v55 = vld [vmem:[#allocation5 + $0x264] sm:$0xf0]  ;;  %v2827_v27 = vld [vmem:[#allocation5 + $0x148] sm:$0xf0]  ;;  %v2803_v43 = vld [vmem:[#allocation5 + $0x118] sm:$0xf0] }
  0xf0   : > { %2290 = vmatpush.bf16.msrb.mxu0 %v3062_v63  ;;  %v2068_v59 = vpop.f32.mrf.mxu0  ;;  %v2778_v63 = vor.u32 %v3855_v51, %v2777_v50  ;;  %v2970_v2 = vor.u32 %v3903_v55, %v2969_v52  ;;  %v2706_v50 = vor.u32 %v3837_v42, %v2705_v41  ;;  %v2681_v51 = vld [vmem:[#allocation5 + $0x10] sm:$0xf]  ;;  %v3831_v52 = vld [vmem:[#allocation5 + $0x24] sm:$0xf0]  ;;  %v4101_v41 = vld [vmem:[#allocation5 + $0x894] sm:$0xf0] }
  0xf1   : > { %2304 = vmatpush.bf16.msrb.mxu1 %v3254_v3  ;;  %v2069_v62 = vadd.f32 %v2068_v59, %v2055_v47  ;;  %v2082_v0 = vpop.f32.mrf.mxu1  ;;  %v3162_v3 = vor.u32 %v3951_v58, %v3161_v56  ;;  %v3933_v47 = vld [vmem:[#allocation5 + $0x354] sm:$0xf0]  ;;  %v2873_v55 = vld [vmem:[#allocation5 + $0x190] sm:$0xf]  ;;  %v3879_v56 = vld [vmem:[#allocation5 + $0x1a4] sm:$0xf0] }
  0xf2   : > { %2318 = vmatpush.bf16.msrb.mxu2 %v3446_v4  ;;  %v2753_v4 = vld [vmem:[#allocation5 + $0xa0] sm:$0xf]  ;;  %v3065_v58 = vld [vmem:[#allocation5 + $0x310] sm:$0xf]  ;;  %v2874_v8 = vor.u32 %v3879_v56, %v2873_v55  ;;  %v3858_v42 = vld [vmem:[#allocation5 + $0x104] sm:$0xf] }
  0xf3   : > { %2332 = vmatpush.bf16.msrb.mxu3 %v3638_v10  ;;  %2291 = vmatmul.bf16.vlgmr.msrb.gmra.mxu0 %v4509_v22  ;;  %v2083_v10 = vadd.f32 %v2082_v0, %v2069_v62  ;;  %v2754_v16 = vor.u32 %v3849_v5, %v2753_v4  ;;  %v3975_v62 = vld [vmem:[#allocation5 + $0x4a4] sm:$0xf0]  ;;  %v4065_v0 = vld [vmem:[#allocation5 + $0x774] sm:$0xf0]  ;;  %v3870_v4 = vld [vmem:[#allocation5 + $0x164] sm:$0xf] }
  0xf4   : > { %2339 = vmatpush.bf16.msra.mxu0 %v2850_v11  ;;  %2305 = vmatmul.bf16.vlgmr.msrb.gmra.mxu1 %v4511_v23  ;;  %v3897_v11 = vld [vmem:[#allocation5 + $0x234] sm:$0xf0]  ;;  %v2851_v5 = vld [vmem:[#allocation5 + $0x178] sm:$0xf0]  ;;  %v4095_v55 = vld [vmem:[#allocation5 + $0x864] sm:$0xf0] }
  0xf5   : > { %2353 = vmatpush.bf16.msra.mxu1 %v3042_v12  ;;  %2319 = vmatmul.bf16.vlgmr.msrb.gmra.mxu2 %v4519_v35  ;;  %v3137_v12 = vld [vmem:[#allocation5 + $0x3a0] sm:$0xf]  ;;  %2507 = vst [vmem:[%s4553_s23] sm:$0xff] %v2083_v10  ;;  %v3918_v10 = vld [vmem:[#allocation5 + $0x2e4] sm:$0xf]  ;;  %v3852_v56 = vld [vmem:[#allocation5 + $0xd4] sm:$0xf] }
  0xf6   : > { %2367 = vmatpush.bf16.msra.mxu2 %v3234_v13  ;;  %2333 = vmatmul.bf16.vlgmr.msrb.gmra.mxu3 %v4521_v39  ;;  %v3945_v13 = vld [vmem:[#allocation5 + $0x3b4] sm:$0xf0] }
  0xf7   : > { %2381 = vmatpush.bf16.msra.mxu3 %v3426_v18  ;;  %v2946_v18 = vor.u32 %v3897_v11, %v2945_v7  ;;  %v3138_v19 = vor.u32 %v3945_v13, %v3137_v12  ;;  %v3043_v11 = vld [vmem:[#allocation5 + $0x2f8] sm:$0xf0]  ;;  %v3258_v13 = vor.u32 %v3975_v62, %v3257_v61  ;;  %v2971_v61 = vld [vmem:[#allocation5 + $0x268] sm:$0xf0] }
  0xf8   : > { %2340 = vmatpush.bf16.msra.mxu0 %v2826_v30  ;;  %v2070_v30 = vpop.f32.mrf.mxu0  ;;  %v2096_v7 = vpop.f32.mrf.mxu2  ;;  %v3046_v21 = vor.u32 %v3918_v10, %v3043_v11  ;;  %v3846_v10 = vld [vmem:[#allocation5 + $0xa4] sm:$0xf]  ;;  %v2755_v11 = vld [vmem:[#allocation5 + $0xb8] sm:$0xf0] }
  0xf9   : > { %2354 = vmatpush.bf16.msra.mxu1 %v3018_v32  ;;  %v3987_v32 = vld [vmem:[#allocation5 + $0x504] sm:$0xf0]  ;;  %v2084_v37 = vpop.f32.mrf.mxu1  ;;  %v2110_v12 = vpop.f32.mrf.mxu3 }
  0xfa   : > { %2368 = vmatpush.bf16.msra.mxu2 %v3210_v34  ;;  %v2071_v34 = vadd.f32 %v2070_v30, %v2057_v17  ;;  %v3306_v33 = vor.u32 %v3987_v32, %v3305_v31  ;;  %v2854_v17 = vor.u32 %v3870_v4, %v2851_v5  ;;  %v2097_v30 = vadd.f32 %v2096_v7, %v522_v15  ;;  %v3521_v4 = vld [vmem:[#allocation5 + $0x6a0] sm:$0xf]  ;;  %v4041_v5 = vld [vmem:[#allocation5 + $0x6b4] sm:$0xf0] }
  0xfb   : > { %2382 = vmatpush.bf16.msra.mxu3 %v3402_v40  ;;  %v3114_v40 = vor.u32 %v3939_v29, %v3113_v28  ;;  %v3912_v28 = vld [vmem:[#allocation5 + $0x2b4] sm:$0xf]  ;;  %v3019_v29 = vld [vmem:[#allocation5 + $0x2c8] sm:$0xf0]  ;;  %v3786_v32 = vor.u32 %v4107_v24, %v3785_v20  ;;  %v3713_v7 = vld [vmem:[#allocation5 + $0x820] sm:$0xf] }
  0xfc   : > { %2341 = vmatpush.bf16.msra.mxu0 %v2802_v46  ;;  %v2085_v44 = vadd.f32 %v2084_v37, %v2071_v34  ;;  %v3089_v46 = vld [vmem:[#allocation5 + $0x340] sm:$0xf]  ;;  %v4053_v37 = vld [vmem:[#allocation5 + $0x714] sm:$0xf0]  ;;  %v2111_v45 = vadd.f32 %v2110_v12, %v2097_v30  ;;  %v4035_v20 = vld [vmem:[#allocation5 + $0x684] sm:$0xf0] }
  0xfd   : > { %2355 = vmatpush.bf16.msra.mxu1 %v2994_v48  ;;  %v3281_v48 = vld [vmem:[#allocation5 + $0x4c0] sm:$0xf]  ;;  %v4083_v24 = vld [vmem:[#allocation5 + $0x804] sm:$0xf0] }
  0xfe   : > { %2369 = vmatpush.bf16.msra.mxu2 %v3186_v49  ;;  %v3981_v49 = vld [vmem:[#allocation5 + $0x4d4] sm:$0xf0]  ;;  %2513 = vst [vmem:[%s4553_s23 + $0x30] sm:$0xff] %v2085_v44  ;;  %v2995_v44 = vld [vmem:[#allocation5 + $0x298] sm:$0xf0] }
  0xff   : > { %2383 = vmatpush.bf16.msra.mxu3 %v3378_v54  ;;  %v3090_v54 = vor.u32 %v3933_v47, %v3089_v46  ;;  %v3282_v59 = vor.u32 %v3981_v49, %v3281_v48  ;;  %v2806_v49 = vor.u32 %v3858_v42, %v2803_v43  ;;  %v3473_v43 = vld [vmem:[#allocation5 + $0x640] sm:$0xf] }
 0x100   : > { %2342 = vmatpush.bf16.msra.mxu0 %v2778_v63  ;;  %v3617_v63 = vld [vmem:[#allocation5 + $0x760] sm:$0xf]  ;;  %v2098_v47 = vpop.f32.mrf.mxu2 }
 0x101   : > { %2356 = vmatpush.bf16.msra.mxu1 %v2970_v2  ;;  %v2682_v2 = vor.u32 %v3831_v52, %v2681_v51  ;;  %v3618_v14 = vor.u32 %v4065_v0, %v3617_v63  ;;  %v3545_v51 = vld [vmem:[#allocation5 + $0x6d0] sm:$0xf]  ;;  %v4047_v52 = vld [vmem:[#allocation5 + $0x6e4] sm:$0xf0] }
 0x102   : > { %2370 = vmatpush.bf16.msra.mxu2 %v3162_v3  ;;  %v4113_v3 = vld [vmem:[#allocation5 + $0x8f4] sm:$0xf0]  ;;  %v3546_v63 = vor.u32 %v4047_v52, %v3545_v51  ;;  %v2899_v51 = vld [vmem:[#allocation5 + $0x1d8] sm:$0xf0] }
 0x103   : > { %2384 = vmatpush.bf16.msra.mxu3 %v3354_v9  ;;  %v3066_v9 = vor.u32 %v3927_v60, %v3065_v58  ;;  %v2779_v58 = vld [vmem:[#allocation5 + $0xe8] sm:$0xf0]  ;;  %v3900_v60 = vld [vmem:[#allocation5 + $0x254] sm:$0xf] }
 0x104   : > { %2343 = vmatpush.bf16.msra.mxu0 %v2754_v16  ;;  %v3810_v16 = vor.u32 %v4113_v3, %v3809_v1  ;;  %v2099_v1 = vadd.f32 %v2098_v47, %v522_v15  ;;  %v2782_v3 = vor.u32 %v3852_v56, %v2779_v58  ;;  %v4077_v47 = vld [vmem:[#allocation5 + $0x7d4] sm:$0xf0] }
 0x105   : > { %2357 = vmatpush.bf16.msra.mxu1 %v2946_v18  ;;  %v3593_v18 = vld [vmem:[#allocation5 + $0x730] sm:$0xf] }
 0x106   : > { %2371 = vmatpush.bf16.msra.mxu2 %v3138_v19  ;;  %v4059_v19 = vld [vmem:[#allocation5 + $0x744] sm:$0xf0] }
 0x107   : > { %2385 = vmatpush.bf16.msra.mxu3 %v3330_v25  ;;  %v3864_v25 = vld [vmem:[#allocation5 + $0x134] sm:$0xf]  ;;  %v3594_v31 = vor.u32 %v4059_v19, %v3593_v18  ;;  %v2758_v19 = vor.u32 %v3846_v10, %v2755_v11  ;;  %v3427_v10 = vld [vmem:[#allocation5 + $0x5f8] sm:$0xf0]  ;;  %v4062_v11 = vld [vmem:[#allocation5 + $0x764] sm:$0xf] }
 0x108   : > { %2344 = vmatpush.bf16.msra.mxu0 %v2730_v36  ;;  %v2830_v34 = vor.u32 %v3864_v25, %v2827_v27  ;;  %v3569_v36 = vld [vmem:[#allocation5 + $0x700] sm:$0xf] }
 0x109   : > { %2358 = vmatpush.bf16.msra.mxu1 %v2922_v38  ;;  %v3761_v38 = vld [vmem:[#allocation5 + $0x880] sm:$0xf]  ;;  %v3570_v46 = vor.u32 %v4053_v37, %v3569_v36  ;;  %v2923_v36 = vld [vmem:[#allocation5 + $0x208] sm:$0xf0] }
 0x10a   : > { %2372 = vmatpush.bf16.msra.mxu2 %v3114_v40  ;;  %v3022_v40 = vor.u32 %v3912_v28, %v3019_v29  ;;  %v3762_v48 = vor.u32 %v4101_v41, %v3761_v38  ;;  %v3840_v28 = vld [vmem:[#allocation5 + $0x74] sm:$0xf]  ;;  %v2731_v29 = vld [vmem:[#allocation5 + $0x88] sm:$0xf0] }
 0x10b   : > { %2386 = vmatpush.bf16.msra.mxu3 %v3306_v33  ;;  %v3906_v33 = vld [vmem:[#allocation5 + $0x284] sm:$0xf]  ;;  %v2734_v42 = vor.u32 %v3840_v28, %v2731_v29  ;;  %v3403_v29 = vld [vmem:[#allocation5 + $0x5c8] sm:$0xf0] }
 0x10c   : > { %2345 = vmatpush.bf16.msra.mxu0 %v2706_v50  ;;  %v2112_v50 = vpop.f32.mrf.mxu3 }
 0x10d   : > { %2359 = vmatpush.bf16.msra.mxu1 %v2898_v53  ;;  %v3737_v53 = vld [vmem:[#allocation5 + $0x850] sm:$0xf]  ;;  %v2113_v18 = vadd.f32 %v2112_v50, %v2099_v1  ;;  %v3882_v50 = vld [vmem:[#allocation5 + $0x1c4] sm:$0xf]  ;;  %v3876_v1 = vld [vmem:[#allocation5 + $0x194] sm:$0xf] }
 0x10e   : > { %2373 = vmatpush.bf16.msra.mxu2 %v3090_v54  ;;  %v2998_v54 = vor.u32 %v3906_v33, %v2995_v44  ;;  %v4029_v33 = vld [vmem:[#allocation5 + $0x654] sm:$0xf0]  ;;  %v3665_v44 = vld [vmem:[#allocation5 + $0x7c0] sm:$0xf] }
 0x10f   : > { %2387 = vmatpush.bf16.msra.mxu3 %v3282_v59  ;;  %v3474_v52 = vor.u32 %v4029_v33, %v3473_v43  ;;  %v3666_v56 = vor.u32 %v4077_v47, %v3665_v44  ;;  %v3379_v33 = vld [vmem:[#allocation5 + $0x598] sm:$0xf0]  ;;  %v4050_v44 = vld [vmem:[#allocation5 + $0x704] sm:$0xf] }
 0x110   : > { %2346 = vmatpush.bf16.msra.mxu0 %v2682_v2  ;;  %v2124_v59 = vpop.f32.mrf.mxu0  ;;  %v3738_v2 = vor.u32 %v4095_v55, %v3737_v53  ;;  %v3449_v53 = vld [vmem:[#allocation5 + $0x610] sm:$0xf]  ;;  %v3763_v47 = vld [vmem:[#allocation5 + $0x898] sm:$0xf0] }
 0x111   : > { %2360 = vmatpush.bf16.msra.mxu1 %v2874_v8  ;;  %v2125_v62 = vadd.f32 %v2124_v59, %v2111_v45  ;;  %v2138_v0 = vpop.f32.mrf.mxu1  ;;  %v2974_v8 = vor.u32 %v3900_v60, %v2971_v61  ;;  %v3641_v59 = vld [vmem:[#allocation5 + $0x790] sm:$0xf]  ;;  %v4071_v60 = vld [vmem:[#allocation5 + $0x7a4] sm:$0xf0]  ;;  %v3828_v61 = vld [vmem:[#allocation5 + $0x14] sm:$0xf] }
 0x112   : > { %2374 = vmatpush.bf16.msra.mxu2 %v3066_v9  ;;  %v4089_v9 = vld [vmem:[#allocation5 + $0x834] sm:$0xf0] }
 0x113   : > { %2388 = vmatpush.bf16.msra.mxu3 %v3258_v13  ;;  %2347 = vmatmul.bf16.vlgmr.msra.gmra.mxu0 %v4497_v57  ;;  %v2139_v12 = vadd.f32 %v2138_v0, %v2125_v62  ;;  %v3894_v13 = vld [vmem:[#allocation5 + $0x224] sm:$0xf]  ;;  %v3714_v15 = vor.u32 %v4089_v9, %v3713_v7  ;;  %v2902_v62 = vor.u32 %v3882_v50, %v2899_v51  ;;  %v2683_v0 = vld [vmem:[#allocation5 + $0x28] sm:$0xf0]  ;;  %v3235_v7 = vld [vmem:[#allocation5 + $0x478] sm:$0xf0] }
 0x114   : > { %2395 = vmatpush.bf16.msrb.mxu0 %v3618_v14  ;;  %2361 = vmatmul.bf16.vlgmr.msra.gmra.mxu1 %v4502_v6  ;;  %v2947_v14 = vld [vmem:[#allocation5 + $0x238] sm:$0xf0]  ;;  %v3948_v51 = vld [vmem:[#allocation5 + $0x3d4] sm:$0xf] }
 0x115   : > { %2409 = vmatpush.bf16.msrb.mxu1 %v3810_v16  ;;  %2375 = vmatmul.bf16.vlgmr.msra.gmra.mxu2 %v4509_v22  ;;  %v3522_v16 = vor.u32 %v4041_v5, %v3521_v4  ;;  %v2950_v25 = vor.u32 %v3894_v13, %v2947_v14  ;;  %v3966_v5 = vld [vmem:[#allocation5 + $0x464] sm:$0xf]  ;;  %v3642_v14 = vor.u32 %v4071_v60, %v3641_v59  ;;  %v4092_v59 = vld [vmem:[#allocation5 + $0x854] sm:$0xf] }
 0x116   : > { %2423 = vmatpush.bf16.msrb.mxu2 %v2854_v17  ;;  %2389 = vmatmul.bf16.vlgmr.msra.gmra.mxu3 %v4511_v23  ;;  %v3497_v17 = vld [vmem:[#allocation5 + $0x670] sm:$0xf] }
 0x117   : > { %2437 = vmatpush.bf16.msrb.mxu3 %v3046_v21  ;;  %v3689_v21 = vld [vmem:[#allocation5 + $0x7f0] sm:$0xf]  ;;  %v3498_v37 = vor.u32 %v4035_v20, %v3497_v17  ;;  %v4110_v17 = vld [vmem:[#allocation5 + $0x8e4] sm:$0xf]  ;;  %v3960_v20 = vld [vmem:[#allocation5 + $0x434] sm:$0xf] }
 0x118   : > { %2396 = vmatpush.bf16.msrb.mxu0 %v3594_v31  ;;  %v2152_v27 = vpop.f32.mrf.mxu2  ;;  %v2126_v31 = vpop.f32.mrf.mxu0  ;;  %v3690_v38 = vor.u32 %v4083_v24, %v3689_v21 }
 0x119   : > { %2410 = vmatpush.bf16.msrb.mxu1 %v3786_v32  ;;  %v2153_v30 = vadd.f32 %v2152_v27, %v2139_v12  ;;  %v2166_v32 = vpop.f32.mrf.mxu3  ;;  %v3619_v12 = vld [vmem:[#allocation5 + $0x778] sm:$0xf0]  ;;  %v4008_v27 = vld [vmem:[#allocation5 + $0x5b4] sm:$0xf] }
 0x11a   : > { %2424 = vmatpush.bf16.msrb.mxu2 %v2830_v34  ;;  %v3888_v34 = vld [vmem:[#allocation5 + $0x1f4] sm:$0xf]  ;;  %v3622_v24 = vor.u32 %v4062_v11, %v3619_v12  ;;  %v3115_v12 = vld [vmem:[#allocation5 + $0x388] sm:$0xf0] }
 0x11b   : > { %2438 = vmatpush.bf16.msrb.mxu3 %v3022_v40  ;;  %v2127_v40 = vadd.f32 %v2126_v31, %v2113_v18  ;;  %v2167_v41 = vadd.f32 %v2166_v32, %v2153_v30  ;;  %v2926_v45 = vor.u32 %v3888_v34, %v2923_v36  ;;  %v3811_v18 = vld [vmem:[#allocation5 + $0x8f8] sm:$0xf0]  ;;  %v4056_v30 = vld [vmem:[#allocation5 + $0x734] sm:$0xf]  ;;  %v3595_v31 = vld [vmem:[#allocation5 + $0x748] sm:$0xf0] }
 0x11c   : > { %2397 = vmatpush.bf16.msrb.mxu0 %v3570_v46  ;;  %v2140_v46 = vpop.f32.mrf.mxu1  ;;  %v3814_v28 = vor.u32 %v4110_v17, %v3811_v18  ;;  %v4104_v32 = vld [vmem:[#allocation5 + $0x8b4] sm:$0xf]  ;;  %v3787_v34 = vld [vmem:[#allocation5 + $0x8c8] sm:$0xf0] }
 0x11d   : > { %2411 = vmatpush.bf16.msrb.mxu1 %v3762_v48  ;;  %v3834_v48 = vld [vmem:[#allocation5 + $0x44] sm:$0xf]  ;;  %2508 = vst [vmem:[%s4553_s23 + $0x8] sm:$0xff] %v2167_v41  ;;  %v2141_v55 = vadd.f32 %v2140_v46, %v2127_v40  ;;  %v3187_v41 = vld [vmem:[#allocation5 + $0x418] sm:$0xf0]  ;;  %v3790_v43 = vor.u32 %v4104_v32, %v3787_v34 }
 0x11e   : > { %2425 = vmatpush.bf16.msrb.mxu2 %v2806_v49  ;;  %v2707_v49 = vld [vmem:[#allocation5 + $0x58] sm:$0xf0]  ;;  %v3954_v40 = vld [vmem:[#allocation5 + $0x404] sm:$0xf]  ;;  %v3936_v11 = vld [vmem:[#allocation5 + $0x374] sm:$0xf] }
 0x11f   : > { %2439 = vmatpush.bf16.msrb.mxu3 %v2998_v54  ;;  %v4023_v54 = vld [vmem:[#allocation5 + $0x624] sm:$0xf0]  ;;  %v2710_v58 = vor.u32 %v3834_v48, %v2707_v49  ;;  %v4098_v46 = vld [vmem:[#allocation5 + $0x884] sm:$0xf]  ;;  %v3190_v48 = vor.u32 %v3954_v40, %v3187_v41  ;;  %v4032_v17 = vld [vmem:[#allocation5 + $0x674] sm:$0xf] }
 0x120   : > { %2398 = vmatpush.bf16.msrb.mxu0 %v3546_v63  ;;  %v2154_v63 = vpop.f32.mrf.mxu2  ;;  %v3450_v9 = vor.u32 %v4023_v54, %v3449_v53  ;;  %v3996_v53 = vld [vmem:[#allocation5 + $0x554] sm:$0xf]  ;;  %v3766_v54 = vor.u32 %v4098_v46, %v3763_v47  ;;  %v3499_v18 = vld [vmem:[#allocation5 + $0x688] sm:$0xf0]  ;;  %v3283_v32 = vld [vmem:[#allocation5 + $0x4d8] sm:$0xf0] }
 0x121   : > { %2412 = vmatpush.bf16.msrb.mxu1 %v3738_v2  ;;  %v2875_v2 = vld [vmem:[#allocation5 + $0x1a8] sm:$0xf0]  ;;  %v2168_v4 = vpop.f32.mrf.mxu3  ;;  %v4026_v34 = vld [vmem:[#allocation5 + $0x644] sm:$0xf]  ;;  %v3667_v40 = vld [vmem:[#allocation5 + $0x7d8] sm:$0xf0] }
 0x122   : > { %2426 = vmatpush.bf16.msrb.mxu2 %v2782_v3  ;;  %v2155_v3 = vadd.f32 %v2154_v63, %v2141_v55  ;;  %v3355_v55 = vld [vmem:[#allocation5 + $0x568] sm:$0xf0]  ;;  %v3139_v63 = vld [vmem:[#allocation5 + $0x3b8] sm:$0xf0] }
 0x123   : > { %2440 = vmatpush.bf16.msrb.mxu3 %v2974_v8  ;;  %v4014_v8 = vld [vmem:[#allocation5 + $0x5e4] sm:$0xf]  ;;  %v3259_v47 = vld [vmem:[#allocation5 + $0x4a8] sm:$0xf0] }
 0x124   : > { %2399 = vmatpush.bf16.msrb.mxu0 %v3522_v16  ;;  %v2169_v13 = vadd.f32 %v2168_v4, %v2155_v3  ;;  %v2686_v16 = vor.u32 %v3828_v61, %v2683_v0  ;;  %v3430_v21 = vor.u32 %v4014_v8, %v3427_v10  ;;  %v3358_v61 = vor.u32 %v3996_v53, %v3355_v55  ;;  %v3990_v0 = vld [vmem:[#allocation5 + $0x524] sm:$0xf]  ;;  %v3523_v4 = vld [vmem:[#allocation5 + $0x6b8] sm:$0xf0] }
 0x125   : > { %2413 = vmatpush.bf16.msrb.mxu1 %v3714_v15  ;;  %v2878_v15 = vor.u32 %v3876_v1, %v2875_v2  ;;  %v3331_v2 = vld [vmem:[#allocation5 + $0x538] sm:$0xf0]  ;;  %v4038_v3 = vld [vmem:[#allocation5 + $0x6a4] sm:$0xf] }
 0x126   : > { %2427 = vmatpush.bf16.msrb.mxu2 %v2758_v19  ;;  %v3238_v19 = vor.u32 %v3966_v5, %v3235_v7  ;;  %2514 = vst [vmem:[%s4553_s23 + $0x38] sm:$0xff] %v2169_v13  ;;  %v4086_v5 = vld [vmem:[#allocation5 + $0x824] sm:$0xf]  ;;  %v3715_v7 = vld [vmem:[#allocation5 + $0x838] sm:$0xf0]  ;;  %v3526_v10 = vor.u32 %v4038_v3, %v3523_v4 }
 0x127   : > { %2441 = vmatpush.bf16.msrb.mxu3 %v2950_v25  ;;  %v3211_v25 = vld [vmem:[#allocation5 + $0x448] sm:$0xf0]  ;;  %v3984_v13 = vld [vmem:[#allocation5 + $0x4f4] sm:$0xf] }
 0x128   : > { %2400 = vmatpush.bf16.msrb.mxu0 %v3498_v37  ;;  %v3214_v36 = vor.u32 %v3960_v20, %v3211_v25  ;;  %v3406_v37 = vor.u32 %v4008_v27, %v3403_v29  ;;  %v3118_v20 = vor.u32 %v3936_v11, %v3115_v12  ;;  %v3502_v25 = vor.u32 %v4032_v17, %v3499_v18  ;;  %v3091_v29 = vld [vmem:[#allocation5 + $0x358] sm:$0xf0] }
 0x129   : > { %2414 = vmatpush.bf16.msrb.mxu1 %v3690_v38  ;;  %v3598_v38 = vor.u32 %v4056_v30, %v3595_v31  ;;  %v3978_v30 = vld [vmem:[#allocation5 + $0x4c4] sm:$0xf] }
 0x12a   : > { %2428 = vmatpush.bf16.msrb.mxu2 %v2734_v42  ;;  %v4002_v42 = vld [vmem:[#allocation5 + $0x584] sm:$0xf] }
 0x12b   : > { %2442 = vmatpush.bf16.msrb.mxu3 %v2926_v45  ;;  %v3571_v45 = vld [vmem:[#allocation5 + $0x718] sm:$0xf0]  ;;  %v3382_v49 = vor.u32 %v4002_v42, %v3379_v33  ;;  %v3067_v33 = vld [vmem:[#allocation5 + $0x328] sm:$0xf0] }
 0x12c   : > { %2401 = vmatpush.bf16.msrb.mxu0 %v3474_v52  ;;  %v3574_v50 = vor.u32 %v4050_v44, %v3571_v45  ;;  %v3163_v52 = vld [vmem:[#allocation5 + $0x3e8] sm:$0xf0]  ;;  %v3972_v44 = vld [vmem:[#allocation5 + $0x494] sm:$0xf] }
 0x12d   : > { %2415 = vmatpush.bf16.msrb.mxu1 %v3666_v56  ;;  %v4044_v56 = vld [vmem:[#allocation5 + $0x6d4] sm:$0xf]  ;;  %v3166_v60 = vor.u32 %v3948_v51, %v3163_v52  ;;  %v3643_v51 = vld [vmem:[#allocation5 + $0x7a8] sm:$0xf0]  ;;  %v3262_v53 = vor.u32 %v3972_v44, %v3259_v47 }
 0x12e   : > { %2429 = vmatpush.bf16.msrb.mxu2 %v2710_v58  ;;  %v3547_v58 = vld [vmem:[#allocation5 + $0x6e8] sm:$0xf0] }
 0x12f   : > { %2443 = vmatpush.bf16.msrb.mxu3 %v2902_v62  ;;  %v3942_v62 = vld [vmem:[#allocation5 + $0x3a4] sm:$0xf] }
 0x130   : > { %2402 = vmatpush.bf16.msrb.mxu0 %v3450_v9  ;;  %v3142_v8 = vor.u32 %v3942_v62, %v3139_v63  ;;  %v3334_v9 = vor.u32 %v3990_v0, %v3331_v2  ;;  %v2180_v27 = vpop.f32.mrf.mxu0 }
 0x131   : > { %2416 = vmatpush.bf16.msrb.mxu1 %v3642_v14  ;;  %v3718_v14 = vor.u32 %v4086_v5, %v3715_v7 }
 0x132   : > { %2430 = vmatpush.bf16.msrb.mxu2 %v2686_v16  ;;  %v3307_v16 = vld [vmem:[#allocation5 + $0x508] sm:$0xf0] }
 0x133   : > { %2444 = vmatpush.bf16.msrb.mxu3 %v2878_v15  ;;  %2403 = vmatmul.bf16.vlgmr.msrb.gmra.mxu0 %v4519_v35  ;;  %v4080_v15 = vld [vmem:[#allocation5 + $0x7f4] sm:$0xf] }
 0x134   : > { %2451 = vmatpush.bf16.msra.mxu0 %v3238_v19  ;;  %2417 = vmatmul.bf16.vlgmr.msrb.gmra.mxu1 %v4521_v39  ;;  %v3691_v19 = vld [vmem:[#allocation5 + $0x808] sm:$0xf0] }
 0x135   : > { %2465 = vmatpush.bf16.msra.mxu1 %v3430_v21  ;;  %2431 = vmatmul.bf16.vlgmr.msrb.gmra.mxu2 %v4497_v57  ;;  %v3739_v57 = vld [vmem:[#allocation5 + $0x868] sm:$0xf0]  ;;  %v523_v21 = vperm.slane %v4539_v26, 2  ;;  %v3694_v31 = vor.u32 %v4080_v15, %v3691_v19  ;;  %v3286_v26 = vor.u32 %v3978_v30, %v3283_v32 }
 0x136   : > { %2479 = vmatpush.bf16.msra.mxu2 %v3622_v24  ;;  %2445 = vmatmul.bf16.vlgmr.msrb.gmra.mxu3 %v4502_v6  ;;  %v3550_v6 = vor.u32 %v4044_v56, %v3547_v58  ;;  %v3742_v1 = vor.u32 %v4092_v59, %v3739_v57  ;;  %v3310_v24 = vor.u32 %v3984_v13, %v3307_v16 }
 0x137   : > { %2493 = vmatpush.bf16.msra.mxu3 %v3814_v28  ;;  %v3930_v28 = vld [vmem:[#allocation5 + $0x344] sm:$0xf]  ;;  %v2181_v45 = vadd.f32 %v2180_v27, %v523_v21 }
 0x138   : > { %2452 = vmatpush.bf16.msra.mxu0 %v3214_v36  ;;  %v3475_v36 = vld [vmem:[#allocation5 + $0x658] sm:$0xf0]  ;;  %v3094_v41 = vor.u32 %v3930_v28, %v3091_v29  ;;  %v2208_v55 = vpop.f32.mrf.mxu2  ;;  %v2182_v59 = vpop.f32.mrf.mxu0 }
 0x139   : > { %2466 = vmatpush.bf16.msra.mxu1 %v3406_v37  ;;  %v2194_v37 = vpop.f32.mrf.mxu1  ;;  %v3478_v42 = vor.u32 %v4026_v34, %v3475_v36 }
 0x13a   : > { %2480 = vmatpush.bf16.msra.mxu2 %v3598_v38  ;;  %v4074_v38 = vld [vmem:[#allocation5 + $0x7c4] sm:$0xf]  ;;  %v2195_v56 = vadd.f32 %v2194_v37, %v2181_v45 }
 0x13b   : > { %2494 = vmatpush.bf16.msra.mxu3 %v3790_v43  ;;  %v3924_v43 = vld [vmem:[#allocation5 + $0x314] sm:$0xf]  ;;  %v3670_v46 = vor.u32 %v4074_v38, %v3667_v40 }
 0x13c   : > { %2453 = vmatpush.bf16.msra.mxu0 %v3190_v48  ;;  %v4020_v48 = vld [vmem:[#allocation5 + $0x614] sm:$0xf]  ;;  %v3070_v52 = vor.u32 %v3924_v43, %v3067_v33 }
 0x13d   : > { %2467 = vmatpush.bf16.msra.mxu1 %v3382_v49  ;;  %v3451_v49 = vld [vmem:[#allocation5 + $0x628] sm:$0xf0] }
 0x13e   : > { %2481 = vmatpush.bf16.msra.mxu2 %v3574_v50  ;;  %v4068_v50 = vld [vmem:[#allocation5 + $0x794] sm:$0xf] }
 0x13f   : > { %2495 = vmatpush.bf16.msra.mxu3 %v3766_v54  ;;  %v3454_v54 = vor.u32 %v4020_v48, %v3451_v49  ;;  %v3646_v58 = vor.u32 %v4068_v50, %v3643_v51 }
 0x140   : > { %2454 = vmatpush.bf16.msra.mxu0 %v3166_v60  ;;  %v2222_v60 = vpop.f32.mrf.mxu3  ;;  %v2210_v0 = vpop.f32.mrf.mxu2 }
 0x141   : > { %2468 = vmatpush.bf16.msra.mxu1 %v3358_v61  ;;  %v2196_v57 = vpop.f32.mrf.mxu1  ;;  %v2183_v61 = vadd.f32 %v2182_v59, %v523_v21 }
 0x142   : > { %2482 = vmatpush.bf16.msra.mxu2 %v3550_v6  ;;  %v2209_v6 = vadd.f32 %v2208_v55, %v2195_v56 }
 0x143   : > { %2496 = vmatpush.bf16.msra.mxu3 %v3742_v1  ;;  %v2197_v62 = vadd.f32 %v2196_v57, %v2183_v61 }
 0x144   : > { %2455 = vmatpush.bf16.msra.mxu0 %v3142_v8  ;;  %v2223_v63 = vadd.f32 %v2222_v60, %v2209_v6 }
 0x145   : > { %2469 = vmatpush.bf16.msra.mxu1 %v3334_v9  ;;  %v2211_v4 = vadd.f32 %v2210_v0, %v2197_v62 }
 0x146   : > { %2483 = vmatpush.bf16.msra.mxu2 %v3526_v10 }
 0x147   : > { %2497 = vmatpush.bf16.msra.mxu3 %v3718_v14 }
 0x148   : > { %2456 = vmatpush.bf16.msra.mxu0 %v3118_v20  ;;  %v2224_v5 = vpop.f32.mrf.mxu3 }
 0x149   : > { %2470 = vmatpush.bf16.msra.mxu1 %v3310_v24  ;;  %v2225_v8 = vadd.f32 %v2224_v5, %v2211_v4 }
 0x14a   : > { %2484 = vmatpush.bf16.msra.mxu2 %v3502_v25 }
 0x14b   : > { %2498 = vmatpush.bf16.msra.mxu3 %v3694_v31 }
 0x14c   : > { %2457 = vmatpush.bf16.msra.mxu0 %v3094_v41 }
 0x14d   : > { %2471 = vmatpush.bf16.msra.mxu1 %v3286_v26 }
 0x14e   : > { %2485 = vmatpush.bf16.msra.mxu2 %v3478_v42 }
 0x14f   : > { %2499 = vmatpush.bf16.msra.mxu3 %v3670_v46 }
 0x150   : > { %2458 = vmatpush.bf16.msra.mxu0 %v3070_v52  ;;  %v2236_v1 = vpop.f32.mrf.mxu0 }
 0x151   : > { %2472 = vmatpush.bf16.msra.mxu1 %v3262_v53  ;;  %v2237_v2 = vadd.f32 %v2236_v1, %v2223_v63  ;;  %v2250_v3 = vpop.f32.mrf.mxu1 }
 0x152   : > { %2486 = vmatpush.bf16.msra.mxu2 %v3454_v54 }
 0x153   : > { %2500 = vmatpush.bf16.msra.mxu3 %v3646_v58  ;;  %2459 = vmatmul.bf16.vlgmr.msra.gmra.mxu0 %v4509_v22  ;;  %v2251_v7 = vadd.f32 %v2250_v3, %v2237_v2 }
 0x154   : > { %2473 = vmatmul.bf16.vlgmr.msra.gmra.mxu1 %v4511_v23 }
 0x155   : > { %2487 = vmatmul.bf16.vlgmr.msra.gmra.mxu2 %v4519_v35  ;;  %2509 = vst [vmem:[%s4553_s23 + $0x10] sm:$0xff] %v2251_v7 }
 0x156   : > { %2501 = vmatmul.bf16.vlgmr.msra.gmra.mxu3 %v4521_v39  ;;  %v4579_v39 = vld [vmem:[#allocation7] sm:$0x3f] }
 0x157   : > { %v524_v12 = vperm.slane %v4579_v39, 3  ;;  %v525_v26 = vperm.slane %v4579_v39, 4  ;;  %v526_v1 = vperm.slane %v4579_v39, 5 }
 0x158   : > { %v2238_v9 = vpop.f32.mrf.mxu0  ;;  %v2264_v35 = vpop.f32.mrf.mxu2 }
 0x159   : > { %v2239_v22 = vadd.f32 %v2238_v9, %v2225_v8  ;;  %v2252_v10 = vpop.f32.mrf.mxu1  ;;  %v2278_v11 = vpop.f32.mrf.mxu3  ;;  %v2265_v13 = vadd.f32 %v2264_v35, %v524_v12 }
 0x15b   : > { %v2253_v23 = vadd.f32 %v2252_v10, %v2239_v22  ;;  %v2279_v14 = vadd.f32 %v2278_v11, %v2265_v13 }
 0x15d   : > { %2515 = vst [vmem:[%s4553_s23 + $0x40] sm:$0xff] %v2253_v23 }
 0x160   : > { %v2266_v16 = vpop.f32.mrf.mxu2 }
 0x161   : > { %v2280_v17 = vpop.f32.mrf.mxu3  ;;  %v2267_v20 = vadd.f32 %v2266_v16, %v524_v12 }
 0x163   : > { %v2281_v24 = vadd.f32 %v2280_v17, %v2267_v20 }
 0x170   : > { %v2292_v18 = vpop.f32.mrf.mxu0 }
 0x171   : > { %v2293_v15 = vadd.f32 %v2292_v18, %v2279_v14  ;;  %v2306_v19 = vpop.f32.mrf.mxu1 }
 0x173   : > { %v2307_v21 = vadd.f32 %v2306_v19, %v2293_v15 }
 0x178   : > { %v2320_v25 = vpop.f32.mrf.mxu2  ;;  %v2294_v28 = vpop.f32.mrf.mxu0 }
 0x179   : > { %v2321_v27 = vadd.f32 %v2320_v25, %v2307_v21  ;;  %v2334_v29 = vpop.f32.mrf.mxu3  ;;  %v2295_v30 = vadd.f32 %v2294_v28, %v2281_v24  ;;  %v2308_v32 = vpop.f32.mrf.mxu1 }
 0x17b   : > { %v2335_v31 = vadd.f32 %v2334_v29, %v2321_v27  ;;  %v2309_v34 = vadd.f32 %v2308_v32, %v2295_v30 }
 0x17d   : > { %2510 = vst [vmem:[%s4553_s23 + $0x18] sm:$0xff] %v2335_v31 }
 0x180   : > { %v2322_v36 = vpop.f32.mrf.mxu2 }
 0x181   : > { %v2323_v37 = vadd.f32 %v2322_v36, %v2309_v34  ;;  %v2336_v38 = vpop.f32.mrf.mxu3 }
 0x183   : > { %v2337_v40 = vadd.f32 %v2336_v38, %v2323_v37 }
 0x185   : > { %2516 = vst [vmem:[%s4553_s23 + $0x48] sm:$0xff] %v2337_v40 }
 0x190   : > { %v2348_v41 = vpop.f32.mrf.mxu0 }
 0x191   : > { %v2362_v42 = vpop.f32.mrf.mxu1  ;;  %v2349_v43 = vadd.f32 %v2348_v41, %v525_v26 }
 0x193   : > { %v2363_v44 = vadd.f32 %v2362_v42, %v2349_v43 }
 0x198   : > { %v2376_v33 = vpop.f32.mrf.mxu2  ;;  %v2350_v45 = vpop.f32.mrf.mxu0 }
 0x199   : > { %v2364_v46 = vpop.f32.mrf.mxu1  ;;  %v2390_v47 = vpop.f32.mrf.mxu3  ;;  %v2351_v48 = vadd.f32 %v2350_v45, %v525_v26  ;;  %v2377_v49 = vadd.f32 %v2376_v33, %v2363_v44 }
 0x19b   : > { %v2365_v50 = vadd.f32 %v2364_v46, %v2351_v48  ;;  %v2391_v51 = vadd.f32 %v2390_v47, %v2377_v49 }
 0x1a0   : > { %v2378_v52 = vpop.f32.mrf.mxu2 }
 0x1a1   : > { %v2379_v56 = vadd.f32 %v2378_v52, %v2365_v50  ;;  %v2392_v58 = vpop.f32.mrf.mxu3 }
 0x1a3   : > { %v2393_v57 = vadd.f32 %v2392_v58, %v2379_v56 }
 0x1b0   : > { %v2404_v53 = vpop.f32.mrf.mxu0 }
 0x1b1   : > { %v2405_v54 = vadd.f32 %v2404_v53, %v2391_v51  ;;  %v2418_v55 = vpop.f32.mrf.mxu1 }
 0x1b3   : > { %v2419_v59 = vadd.f32 %v2418_v55, %v2405_v54 }
 0x1b5   : > { %2511 = vst [vmem:[%s4553_s23 + $0x20] sm:$0xff] %v2419_v59 }
 0x1b8   : > { %v2406_v60 = vpop.f32.mrf.mxu0  ;;  %v2432_v63 = vpop.f32.mrf.mxu2 }
 0x1b9   : > { %v2407_v61 = vadd.f32 %v2406_v60, %v2393_v57  ;;  %v2420_v6 = vpop.f32.mrf.mxu1  ;;  %v2446_v0 = vpop.f32.mrf.mxu3  ;;  %v2433_v2 = vadd.f32 %v2432_v63, %v526_v1 }
 0x1bb   : > { %v2421_v62 = vadd.f32 %v2420_v6, %v2407_v61  ;;  %v2447_v4 = vadd.f32 %v2446_v0, %v2433_v2 }
 0x1bd   : > { %2517 = vst [vmem:[%s4553_s23 + $0x50] sm:$0xff] %v2421_v62 }
 0x1c0   : > { %v2434_v3 = vpop.f32.mrf.mxu2 }
 0x1c1   : > { %v2448_v5 = vpop.f32.mrf.mxu3  ;;  %v2435_v22 = vadd.f32 %v2434_v3, %v526_v1 }
 0x1c3   : > { %v2449_v35 = vadd.f32 %v2448_v5, %v2435_v22 }
 0x1d0   : > { %v2460_v7 = vpop.f32.mrf.mxu0 }
 0x1d1   : > { %v2461_v8 = vadd.f32 %v2460_v7, %v2447_v4  ;;  %v2474_v9 = vpop.f32.mrf.mxu1 }
 0x1d3   : > { %v2475_v10 = vadd.f32 %v2474_v9, %v2461_v8 }
 0x1d8   : > { %v2488_v23 = vpop.f32.mrf.mxu2  ;;  %v2462_v13 = vpop.f32.mrf.mxu0 }
 0x1d9   : > { %v2489_v11 = vadd.f32 %v2488_v23, %v2475_v10  ;;  %v2502_v12 = vpop.f32.mrf.mxu3  ;;  %v2463_v14 = vadd.f32 %v2462_v13, %v2449_v35  ;;  %v2476_v16 = vpop.f32.mrf.mxu1 }
 0x1db   : > { %v2503_v39 = vadd.f32 %v2502_v12, %v2489_v11  ;;  %v2477_v17 = vadd.f32 %v2476_v16, %v2463_v14 }
 0x1dd   : > { %2512 = vst [vmem:[%s4553_s23 + $0x28] sm:$0xff] %v2503_v39 }
 0x1e0   : > { %v2490_v18 = vpop.f32.mrf.mxu2 }
 0x1e1   : > { %v2491_v15 = vadd.f32 %v2490_v18, %v2477_v17  ;;  %v2504_v19 = vpop.f32.mrf.mxu3 }
 0x1e3   : > { %v2505_v20 = vadd.f32 %v2504_v19, %v2491_v15 }
 0x1e5   : > { %2518 = vst [vmem:[%s4553_s23 + $0x58] sm:$0xff] %v2505_v20 }
 0x1e6   : > { %4308 = shalt.err (!%p4305_p10)
}
 0x1e7   : > { %s4357_s29 = smov 768   ;;  %s4358_s25 = smov 48  }
 0x1e8   : > { %4129 = dma.vmem_to_hbm [thread:$0]  (%p4448_p3), %s2534_s4, 1536, %s2536_s5, %s2520_s16, %s4357_s29, %s4357_s29, %s4358_s25  }
 0x1e9 PF: > { %s2550_s26 = sand.u32 1, %s4339_s12   ;;  %p4635_p12 = scmp.ge.s32.totalorder %s4351_s15, 2 }
 0x1ea   : > { %s2551_s18 = scalar_lea.sflag [#allocation4], %s2550_s26 }
 0x1eb   : > { %p4143_p13 = pnand %p4635_p12, %p4414_p6 }
 0x1ed   : > { %p4144_p0 = pneg %p4143_p13 }
 0x1ef   : > { %4334 = dma.done.wait (%p4144_p0), %s2551_s18, 1536  }
 0x1f0   : > { %4336 = vsyncadd (%p4144_p0), %s2551_s18, 4294965760  ;;  %p17_p5 = scmp.ge.s32.totalorder %s4438_s6, 4   ;;  %s4636_s12 = smov %s4343_s13 }
 0x1f1   : > { %s4637_s13 = smov %s4347_s14  ;;  %s4638_s14 = smov %s4454_s10 }
 0x1f2   : > { %s4639_s15 = smov %s4438_s6  ;;  %19 = sbr.rel (!%p17_p5) target bundleno = 6 (0x6), region = 85 }
 0x1f7   :  { %2557 = vsyncpa [#allocation3], 1 }
 0x1f8   :  { %2559 = vsyncpa [#allocation3 + $0x1], 1 }
 0x1f9   :  { %2560 = vsyncpa [#allocation6], 1 }
 0x1fa   :  { %2561 = vsyncpa [#allocation4], 1 }
 0x1fb   :  { %2563 = vsyncpa [#allocation4 + $0x1], 1 }

</bundles_post_ra>
